<compile_context>
chip_gen: v6e
topology: v6e:2x2x1
jax: 0.10.0
libtpu: 0.0.40
codegen_flags: <defaults>
</compile_context>

<pallas_src>
import functools
import math

import numpy as np
import jax
import jax.numpy as jnp
from jax.experimental import pallas as pl
from jax.experimental.pallas import tpu as pltpu


_BINS = {
    'dist': np.arange(50, 2750, 50, dtype=np.int64),           # 54 bins
    'deci': np.array([10000, 1000, 100, 10], dtype=np.int64),  # 4 bins
}


def _round_up(x: int, m: int) -> int:
    return ((x + m - 1) // m) * m


def _l1loss_kernel(pred_ref, w_ref, tgt_ref, out_ref, acc_ref, *,
                   scale: float, rem_groups: int, inv_n: float):
    # pred_ref: (TG, G*NB)  VMEM, native dtype (f32 or bf16), lane-dense
    # w_ref:    (G*NB, G)   VMEM bf16, block-diagonal unit bins; resident across steps
    # tgt_ref:  (TG, G)     VMEM, native dtype, lane-dense
    # out_ref:  (1, 1)      VMEM f32 (same block every step; written at finalize)
    # acc_ref:  (TG, G)     VMEM f32 scratch, persists across grid steps
    i = pl.program_id(0)
    last = pl.num_programs(0) - 1

    @pl.when(i == 0)
    def _init():
        acc_ref[...] = jnp.zeros_like(acc_ref)

    pred = pred_ref[...]
    w = w_ref[...]
    if pred.dtype == jnp.bfloat16:
        # bf16 straight into the MXU: products are exact, accumulation in f32.
        preds = jnp.dot(pred, w, preferred_element_type=jnp.float32)
    else:
        # Exact hi/lo bf16 split of f32 pred (W entries are exact in bf16), so the
        # MXU path keeps ~f32 accuracy without relying on f32-matmul pass selection.
        p = pred.astype(jnp.float32)
        hi = p.astype(jnp.bfloat16)
        lo = (p - hi.astype(jnp.float32)).astype(jnp.bfloat16)
        preds = (jnp.dot(hi, w, preferred_element_type=jnp.float32)
                 + jnp.dot(lo, w, preferred_element_type=jnp.float32))

    diff = jnp.abs(preds * scale - tgt_ref[...].astype(jnp.float32))   # (TG, G), lane-dense

    if rem_groups == 0:
        # Tiles divide evenly (zero-padded rows contribute |0-0| = 0): never mask.
        acc_ref[...] += diff
    else:
        @pl.when(i != last)
        def _steady():
            acc_ref[...] += diff

        @pl.when(i == last)
        def _masked():
            # Only the Pallas-padded groups of the final partial tile hold garbage;
            # keep this a select (NaN-safe), and only on the last step.
            gid = jax.lax.broadcasted_iota(jnp.int32, diff.shape, 0)
            acc_ref[...] += jnp.where(gid < rem_groups, diff, 0.0)

    @pl.when(i == last)
    def _finalize():
        out_ref[...] = jnp.sum(acc_ref[...], keepdims=True) * inv_n


def l1_loss(pred: jnp.ndarray, target: jnp.ndarray, mode: str = 'dist',
            tile_rows: int | None = None) -> jnp.ndarray:
    if mode not in _BINS:
        raise ValueError(f"unknown mode: {mode}")
    bins = _BINS[mode]
    B, NB = pred.shape
    assert NB == bins.shape[0], f"pred bin dim {NB} != len(bins) {bins.shape[0]}"

    scale = int(np.gcd.reduce(bins))             # 50 ('dist') / 10 ('deci')
    unit = (bins // scale).astype(np.float32)    # 1..54 / [1000,100,10,1]; exact in bf16

    G = math.lcm(NB, 128) // NB                  # rows folded into one lane-dense group
    GC = G * NB                                  # group width; multiple of 128

    # Pad the batch to a multiple of G with zeros (zero rows contribute |0 - 0| = 0).
    B_pad = _round_up(B, G)
    if B_pad != B:
        pred = jnp.pad(pred, ((0, B_pad - B), (0, 0)))
        target = jnp.pad(target, (0, B_pad - B))
    num_groups = B_pad // G

    pred2 = pred.reshape(num_groups, GC)         # contiguous row-major reshape: free
    tgt2 = target.reshape(num_groups, G)         # lane-dense target

    # Block-diagonal contraction matrix: W[r*NB + j, r] = bins[j] / scale.
    W = np.zeros((G, NB, G), np.float32)
    for r in range(G):
        W[r, :, r] = unit
    w = jnp.asarray(W.reshape(GC, G), dtype=jnp.bfloat16)   # unit bins are exact in bf16

    # Tile size: ~2 MiB of pred per grid step (double-buffered -> ~4 MiB), which
    # amortizes per-step overhead and fits every generation's scoped-VMEM default.
    if tile_rows is not None:
        tile_groups = max(1, tile_rows // G)
    else:
        tile_groups = max(8, (2 << 20) // (GC * pred.dtype.itemsize))
    tile_groups = max(8, (tile_groups // 8) * 8)
    if tile_groups >= num_groups:
        tile_groups = num_groups                 # single tile; full-dim block is legal
    num_tiles = pl.cdiv(num_groups, tile_groups)
    rem_groups = num_groups % tile_groups        # valid groups in the last (partial) tile

    kernel = functools.partial(
        _l1loss_kernel,
        scale=float(scale), rem_groups=rem_groups, inv_n=1.0 / float(B))

    out = pl.pallas_call(
        kernel,
        out_shape=jax.ShapeDtypeStruct((1, 1), jnp.float32),
        grid_spec=pltpu.PrefetchScalarGridSpec(
            num_scalar_prefetch=0,
            grid=(num_tiles,),
            in_specs=[
                pl.BlockSpec((tile_groups, GC), lambda i: (i, 0)),  # pred tile (lane-dense)
                pl.BlockSpec((GC, G), lambda i: (0, 0)),            # W, resident across steps
                pl.BlockSpec((tile_groups, G), lambda i: (i, 0)),   # target tile (lane-dense)
            ],
            out_specs=pl.BlockSpec((1, 1), lambda i: (0, 0)),       # scalar result
            scratch_shapes=[pltpu.VMEM((tile_groups, G), jnp.float32)],  # lane-dense accum
        ),
        compiler_params=pltpu.CompilerParams(
            dimension_semantics=("arbitrary",)),                    # reduction axis
    )(pred2, w, tgt2)
    return out[0, 0]


def l1_loss_ref(pred, target, mode='dist'):
    bins = jnp.asarray(_BINS[mode]).astype(jnp.float32)
    preds = jnp.sum(pred.astype(jnp.float32) * bins[None, :], axis=1)
    return jnp.mean(jnp.abs(preds - target.astype(jnp.float32)))


if __name__ == "__main__":
    key = jax.random.PRNGKey(0)
    k1, k2, k3, k4 = jax.random.split(key, 4)
    NB = _BINS['dist'].shape[0]          # 54

    # --- test 1: mode='dist', tiny batch, f32, single tile ----------------------
    B = 8
    pred = jax.nn.softmax(jax.random.normal(k1, (B, NB), dtype=jnp.float32), axis=1)
    target = jax.random.uniform(k2, (B,), jnp.float32, 100.0, 2000.0)
    loss = jax.block_until_ready(l1_loss(pred, target, mode='dist'))
    ref = l1_loss_ref(pred, target, mode='dist')
    assert jnp.allclose(loss, ref, rtol=5e-4, atol=1e-2), (loss, ref)

    # --- test 2: mode='deci', 4 bins --------------------------------------------
    NB2 = _BINS['deci'].shape[0]         # 4
    pred2 = jax.nn.softmax(jax.random.normal(k3, (B, NB2), dtype=jnp.float32), axis=1)
    target2 = jax.random.uniform(k4, (B,), jnp.float32, 10.0, 5000.0)
    loss2 = jax.block_until_ready(l1_loss(pred2, target2, mode='deci'))
    ref2 = l1_loss_ref(pred2, target2, mode='deci')
    assert jnp.allclose(loss2, ref2, rtol=5e-4, atol=1e-2), (loss2, ref2)

    # --- test 3: multi-tile grid with masked partial last tile, bf16 pred --------
    B3 = 1250                            # pads to 1280 rows = 20 groups of 64
    pred3 = jax.nn.softmax(
        jax.random.normal(k1, (B3, NB), dtype=jnp.float32), axis=1).astype(jnp.bfloat16)
    target3 = jax.random.uniform(k2, (B3,), jnp.float32, 100.0, 2000.0)
    loss3 = jax.block_until_ready(l1_loss(pred3, target3, mode='dist', tile_rows=1024))
    ref3 = l1_loss_ref(pred3, target3, mode='dist')
    assert jnp.allclose(loss3, ref3, rtol=5e-4, atol=1e-2), (loss3, ref3)

    # --- test 4: default tile sizing, f32, padded batch --------------------------
    loss4 = jax.block_until_ready(
        l1_loss(pred3.astype(jnp.float32), target3, mode='dist'))
    ref4 = l1_loss_ref(pred3.astype(jnp.float32), target3, mode='dist')
    assert jnp.allclose(loss4, ref4, rtol=5e-4, atol=1e-2), (loss4, ref4)

    print("KERNEL_OK")
</pallas_src>

<mosaic_0001>
module attributes {stable_mosaic.version = 11 : i64} {
  func.func @_l1loss_kernel(%arg0: i32, %arg1: memref<1x3456xf32, #tpu.memory_space<vmem>>, %arg2: memref<3456x64xbf16, #tpu.memory_space<vmem>>, %arg3: memref<1x64xf32, #tpu.memory_space<vmem>>, %arg4: memref<1x1xf32, #tpu.memory_space<vmem>>, %arg5: memref<1x64xf32, #tpu.memory_space<vmem>>) attributes {dimension_semantics = [#tpu.dimension_semantics<arbitrary>], iteration_bounds = array<i64: 1>, scalar_prefetch = 0 : i64, scratch_operands = 1 : i64, tpu.core_type = #tpu.core_type<tc>, window_params = [{transform_indices = @transform_0, window_bounds = array<i64: 1, 3456>}, {pipeline_mode = #tpu.pipeline_mode<synchronous>, transform_indices = @transform_1, window_bounds = array<i64: 3456, 64>}, {transform_indices = @transform_2, window_bounds = array<i64: 1, 64>}, {pipeline_mode = #tpu.pipeline_mode<synchronous>, transform_indices = @transform_3, window_bounds = array<i64: 1, 1>}]} {
    %c0_i32 = arith.constant 0 : i32
    %0 = arith.cmpi eq, %arg0, %c0_i32 : i32
    %1 = arith.extui %0 : i1 to i32
    %c0_i32_0 = arith.constant 0 : i32
    %2 = arith.cmpi ne, %1, %c0_i32_0 : i32
    scf.if %2 {
      %cst_14 = arith.constant 0.000000e+00 : f32
      %23 = vector.broadcast %cst_14 : f32 to vector<1x64xf32>
      %c0_15 = arith.constant 0 : index
      %c0_16 = arith.constant 0 : index
      %24 = vector.load %arg5[%c0_15, %c0_16] : memref<1x64xf32, #tpu.memory_space<vmem>>, vector<1x64xf32>
      tpu.vector_store %arg5[%c0_15, %c0_16], %23 {strides = array<i32>} : memref<1x64xf32, #tpu.memory_space<vmem>>, vector<1x64xf32>,
    } else {
    }
    %c0 = arith.constant 0 : index
    %c0_1 = arith.constant 0 : index
    %3 = vector.load %arg1[%c0, %c0_1] : memref<1x3456xf32, #tpu.memory_space<vmem>>, vector<1x3456xf32>
    %c0_2 = arith.constant 0 : index
    %c0_3 = arith.constant 0 : index
    %4 = vector.load %arg2[%c0_2, %c0_3] : memref<3456x64xbf16, #tpu.memory_space<vmem>>, vector<3456x64xbf16>
    %5 = arith.truncf %3 : vector<1x3456xf32> to vector<1x3456xbf16>
    %6 = arith.extf %5 : vector<1x3456xbf16> to vector<1x3456xf32>
    %7 = arith.subf %3, %6 : vector<1x3456xf32>
    %8 = arith.truncf %7 : vector<1x3456xf32> to vector<1x3456xbf16>
    %cst = arith.constant dense<0.000000e+00> : vector<1x64xf32>
    %9 = tpu.matmul %5, %4, %cst {dimension_numbers = #tpu.dot_dimension_numbers<[1], [0], [0], [1], [0, 0, 1, 1], [], []>} : vector<1x3456xbf16>, vector<3456x64xbf16>, vector<1x64xf32> -> vector<1x64xf32>
    %cst_4 = arith.constant dense<0.000000e+00> : vector<1x64xf32>
    %10 = tpu.matmul %8, %4, %cst_4 {dimension_numbers = #tpu.dot_dimension_numbers<[1], [0], [0], [1], [0, 0, 1, 1], [], []>} : vector<1x3456xbf16>, vector<3456x64xbf16>, vector<1x64xf32> -> vector<1x64xf32>
    %11 = arith.addf %9, %10 : vector<1x64xf32>
    %cst_5 = arith.constant 5.000000e+01 : f32
    %12 = vector.broadcast %cst_5 : f32 to vector<1x64xf32>
    %13 = arith.mulf %11, %12 : vector<1x64xf32>
    %c0_6 = arith.constant 0 : index
    %c0_7 = arith.constant 0 : index
    %14 = vector.load %arg3[%c0_6, %c0_7] : memref<1x64xf32, #tpu.memory_space<vmem>>, vector<1x64xf32>
    %15 = arith.subf %13, %14 : vector<1x64xf32>
    %16 = math.absf %15 : vector<1x64xf32>
    %c0_8 = arith.constant 0 : index
    %c0_9 = arith.constant 0 : index
    %17 = vector.load %arg5[%c0_8, %c0_9] : memref<1x64xf32, #tpu.memory_space<vmem>>, vector<1x64xf32>
    %18 = arith.addf %17, %16 : vector<1x64xf32>
    %c0_10 = arith.constant 0 : index
    %c0_11 = arith.constant 0 : index
    %19 = vector.load %arg5[%c0_10, %c0_11] : memref<1x64xf32, #tpu.memory_space<vmem>>, vector<1x64xf32>
    tpu.vector_store %arg5[%c0_10, %c0_11], %18 {strides = array<i32>} : memref<1x64xf32, #tpu.memory_space<vmem>>, vector<1x64xf32>,
    %c0_i32_12 = arith.constant 0 : i32
    %20 = arith.cmpi eq, %arg0, %c0_i32_12 : i32
    %21 = arith.extui %20 : i1 to i32
    %c0_i32_13 = arith.constant 0 : i32
    %22 = arith.cmpi ne, %21, %c0_i32_13 : i32
    scf.if %22 {
      %c0_14 = arith.constant 0 : index
      %c0_15 = arith.constant 0 : index
      %23 = vector.load %arg5[%c0_14, %c0_15] : memref<1x64xf32, #tpu.memory_space<vmem>>, vector<1x64xf32>
      %24 = vector.shape_cast %23 : vector<1x64xf32> to vector<1x1x64xf32>
      %cst_16 = arith.constant dense<0.000000e+00> : vector<1xf32>
      %25 = vector.multi_reduction <add>, %24, %cst_16 [1, 2] : vector<1x1x64xf32> to vector<1xf32>
      %26 = vector.shape_cast %25 : vector<1xf32> to vector<1x1x1xf32>
      %27 = vector.extract %26[0, 0, 0] : f32 from vector<1x1x1xf32>
      %28 = vector.broadcast %27 : f32 to vector<1x1xf32>
      %cst_17 = arith.constant 1.250000e-01 : f32
      %29 = vector.broadcast %cst_17 : f32 to vector<1x1xf32>
      %30 = arith.mulf %28, %29 : vector<1x1xf32>
      %c0_18 = arith.constant 0 : index
      %c0_19 = arith.constant 0 : index
      %31 = vector.load %arg4[%c0_18, %c0_19] : memref<1x1xf32, #tpu.memory_space<vmem>>, vector<1x1xf32>
      tpu.vector_store %arg4[%c0_18, %c0_19], %30 {strides = array<i32>} : memref<1x1xf32, #tpu.memory_space<vmem>>, vector<1x1xf32>,
    } else {
    }
    return
  }
  func.func @transform_0(%arg0: i32) -> (i32, i32) {
    %c0_i32 = arith.constant 0 : i32
    %c0_i32_0 = arith.constant 0 : i32
    return %arg0, %c0_i32 : i32, i32
  }
  func.func @transform_1(%arg0: i32) -> (i32, i32) {
    %c0_i32 = arith.constant 0 : i32
    %c0_i32_0 = arith.constant 0 : i32
    %c0_i32_1 = arith.constant 0 : i32
    return %c0_i32, %c0_i32_0 : i32, i32
  }
  func.func @transform_2(%arg0: i32) -> (i32, i32) {
    %c0_i32 = arith.constant 0 : i32
    %c0_i32_0 = arith.constant 0 : i32
    return %arg0, %c0_i32 : i32, i32
  }
  func.func @transform_3(%arg0: i32) -> (i32, i32) {
    %c0_i32 = arith.constant 0 : i32
    %c0_i32_0 = arith.constant 0 : i32
    %c0_i32_1 = arith.constant 0 : i32
    return %c0_i32, %c0_i32_0 : i32, i32
  }
}

</mosaic_0001>

<bundles_post_ra>
// kernel: tpu_custom_call.1
= control target key start
LH: loop header
LB: loop body
LE: loop exit
PB: predicated region body
PF: predicated region fallthrough
CT: control target
= control target key end

     0   :  { %v462_v16 = vlaneseq  ;;  %s6422_s0 = inlined_call_operand.vmem [shape: f32[1,3456], index: 0, kind: input, shape index: {}]   ;;  %s6423_s1 = inlined_call_operand.vmem [shape: bf16[3456,64], index: 1, kind: input, shape index: {}]   ;;  %s6424_s2 = inlined_call_operand.vmem [shape: f32[1,64], index: 2, kind: input, shape index: {}]   ;;  %s6425_s3 = inlined_call_operand.hbm [shape: f32[1,1], index: 3, kind: output, shape index: {}]  }
   0x1   :  { %v4330_v0 = vld [vmem:[%s6423_s1 + $0x78] sm:$0xff]   ;;  %v4334_v4 = vld [vmem:[%s6423_s1 + $0x70] sm:$0xff]   ;;  %v4338_v8 = vld [vmem:[%s6423_s1 + $0x68] sm:$0xff]  }
   0x2   :  { %v4331_v1 = vld [vmem:[%s6423_s1 + $0xf8] sm:$0xff]   ;;  %3694 = vmatprep.subr.bf16.mxu0 %v4330_v0  ;;  %v4335_v5 = vld [vmem:[%s6423_s1 + $0xf0] sm:$0xff]   ;;  %v4339_v9 = vld [vmem:[%s6423_s1 + $0xe8] sm:$0xff]   ;;  %v4805_v21 = vshrl.u32 %v462_v16, 7 }
   0x3   :  { %v4332_v2 = vld [vmem:[%s6423_s1 + $0x38] sm:$0xff]   ;;  %3716 = vmatprep.subr.bf16.mxu1 %v4331_v1  ;;  %v4336_v6 = vld [vmem:[%s6423_s1 + $0x30] sm:$0xff]   ;;  %v4340_v10 = vld [vmem:[%s6423_s1 + $0x28] sm:$0xff]  }
   0x4   :  { %v4333_v3 = vld [vmem:[%s6423_s1 + $0xb8] sm:$0xff]   ;;  %3695 = vmatpush3.bf16.msra.mxu0 %v4332_v2  ;;  %v4337_v7 = vld [vmem:[%s6423_s1 + $0xb0] sm:$0xff]   ;;  %v4341_v11 = vld [vmem:[%s6423_s1 + $0xa8] sm:$0xff]   ;;  %v4820_v26 = vsub.s32 0, %v4805_v21  ;;  %v4826_v28 = vsub.s32 1, %v4805_v21  ;;  %v4832_v30 = vsub.s32 2, %v4805_v21 }
   0x5   :  { %3717 = vmatpush3.bf16.msra.mxu1 %v4333_v3  ;;  %3696 = vmatprep.subr.bf16.mxu0 %v4334_v4  ;;  %v4342_v12 = vld [vmem:[%s6423_s1 + $0x60] sm:$0xff]   ;;  %v4346_v17 = vld [vmem:[%s6423_s1 + $0x58] sm:$0xff]   ;;  %v4350_v22 = vld [vmem:[%s6423_s1 + $0x50] sm:$0xff]   ;;  %v4838_v32 = vsub.s32 3, %v4805_v21  ;;  %v4844_v34 = vsub.s32 4, %v4805_v21  ;;  %v4850_v36 = vsub.s32 5, %v4805_v21 }
   0x6   :  { %3718 = vmatprep.subr.bf16.mxu1 %v4335_v5  ;;  %v4343_v13 = vld [vmem:[%s6423_s1 + $0xe0] sm:$0xff]   ;;  %v4347_v18 = vld [vmem:[%s6423_s1 + $0xd8] sm:$0xff]   ;;  %v4351_v23 = vld [vmem:[%s6423_s1 + $0xd0] sm:$0xff]   ;;  %v4856_v38 = vsub.s32 6, %v4805_v21  ;;  %v4862_v40 = vsub.s32 7, %v4805_v21 }
   0x7   :  { %v4344_v14 = vld [vmem:[%s6423_s1 + $0x20] sm:$0xff]   ;;  %v4348_v19 = vld [vmem:[%s6423_s1 + $0x18] sm:$0xff]   ;;  %v4352_v24 = vld [vmem:[%s6423_s1 + $0x10] sm:$0xff]   ;;  %v4721_v5 = vmov 1966171168  }
   0x8   :  { %3697 = vmatpush3.bf16.msra.mxu0 %v4336_v6  ;;  %v4345_v15 = vld [vmem:[%s6423_s1 + $0xa0] sm:$0xff]   ;;  %v4349_v20 = vld [vmem:[%s6423_s1 + $0x98] sm:$0xff]   ;;  %v4353_v25 = vld [vmem:[%s6423_s1 + $0x90] sm:$0xff]   ;;  %v683_v6 = vunpack.c.l.s4 %v4721_v5 }
   0x9   :  { %3719 = vmatpush3.bf16.msra.mxu1 %v4337_v7  ;;  %3698 = vmatprep.subr.bf16.mxu0 %v4338_v8  ;;  %v4354_v27 = vld [vmem:[%s6423_s1 + $0x48] sm:$0xff]   ;;  %v4358_v35 = vld [vmem:[%s6423_s1 + $0x40] sm:$0xff]   ;;  %v4362_v43 = vld [vmem:[%s6423_s1 + $0x178] sm:$0xff]  }
   0xa   :  { %3720 = vmatprep.subr.bf16.mxu1 %v4339_v9  ;;  %v4355_v29 = vld [vmem:[%s6423_s1 + $0xc8] sm:$0xff]   ;;  %v4359_v37 = vld [vmem:[%s6423_s1 + $0xc0] sm:$0xff]   ;;  %v4363_v52 = vld [vmem:[%s6423_s1 + $0x1f8] sm:$0xff]  }
   0xb   :  { %v4356_v31 = vld [vmem:[%s6423_s1 + $0x8] sm:$0xff]   ;;  %v4360_v39 = vld [vmem:[%s6423_s1] sm:$0xff]   ;;  %v4382_v5 = vld [vmem:[%s6423_s1 + $0x150] sm:$0xff]  }
   0xc   :  { %3699 = vmatpush3.bf16.msra.mxu0 %v4340_v10  ;;  %v4357_v33 = vld [vmem:[%s6423_s1 + $0x88] sm:$0xff]   ;;  %v4361_v41 = vld [vmem:[%s6423_s1 + $0x80] sm:$0xff]  }
   0xd   :  { %3721 = vmatpush3.bf16.msra.mxu1 %v4341_v11  ;;  %3700 = vmatprep.subr.bf16.mxu0 %v4342_v12  ;;  %v22_v42 = vld [vmem:[%s6422_s0] sm:$0xff]  ;;  %v684_v11 = vunpack.c.0.s8 %v683_v6  ;;  %v4383_v6 = vld [vmem:[%s6423_s1 + $0x1d0] sm:$0xff]  }
   0xe   :  { %3722 = vmatprep.subr.bf16.mxu1 %v4343_v13  ;;  %v465_v44 = vrot.slane %v22_v42, %v4820_v26  ;;  %v469_v45 = vrot.slane %v22_v42, %v4826_v28  ;;  %v473_v46 = vrot.slane %v22_v42, %v4832_v30  ;;  %v477_v47 = vrot.slane %v22_v42, %v4838_v32 }
   0xf   :  { %v481_v48 = vrot.slane %v22_v42, %v4844_v34  ;;  %v485_v49 = vrot.slane %v22_v42, %v4850_v36  ;;  %v489_v50 = vrot.slane %v22_v42, %v4856_v38  ;;  %v493_v51 = vrot.slane %v22_v42, %v4862_v40 }
  0x10   :  { %3701 = vmatpush3.bf16.msra.mxu0 %v4344_v14  ;;  %v4884_v53 = vpack.c.bf16 %v465_v44, %v465_v44  ;;  %v4886_v54 = vpack.c.bf16 %v469_v45, %v469_v45  ;;  %v4888_v55 = vpack.c.bf16 %v473_v46, %v473_v46  ;;  %v4890_v56 = vpack.c.bf16 %v477_v47, %v477_v47  ;;  %v4367_v44 = vld [vmem:[%s6423_s1 + $0x1f0] sm:$0xff]  }
  0x11   :  { %3723 = vmatpush3.bf16.msra.mxu1 %v4345_v15  ;;  %3702 = vmatprep.subr.bf16.mxu0 %v4346_v17  ;;  %v4892_v57 = vpack.c.bf16 %v481_v48, %v481_v48  ;;  %v4894_v58 = vpack.c.bf16 %v485_v49, %v485_v49  ;;  %v4896_v59 = vpack.c.bf16 %v489_v50, %v489_v50  ;;  %v4368_v45 = vld [vmem:[%s6423_s1 + $0x130] sm:$0xff]   ;;  %v4370_v49 = vld [vmem:[%s6423_s1 + $0x168] sm:$0xff]  }
  0x12   :  { %3724 = vmatprep.subr.bf16.mxu1 %v4347_v18  ;;  %v4898_v60 = vpack.c.bf16 %v493_v51, %v493_v51  ;;  %v624_v61 = vunpack.c.l.bf16 %v4884_v53  ;;  %v625_v62 = vunpack.c.l.bf16 %v4886_v54  ;;  %v626_v63 = vunpack.c.l.bf16 %v4888_v55  ;;  %v4369_v48 = vld [vmem:[%s6423_s1 + $0x1b0] sm:$0xff]   ;;  %v4371_v50 = vld [vmem:[%s6423_s1 + $0x1e8] sm:$0xff]  }
  0x13   :  { %v627_v0 = vunpack.c.l.bf16 %v4890_v56  ;;  %v628_v1 = vunpack.c.l.bf16 %v4892_v57  ;;  %v629_v2 = vunpack.c.l.bf16 %v4894_v58  ;;  %v630_v3 = vunpack.c.l.bf16 %v4896_v59  ;;  %v4372_v51 = vld [vmem:[%s6423_s1 + $0x128] sm:$0xff]  }
  0x14   :  { %3703 = vmatpush3.bf16.msra.mxu0 %v4348_v19  ;;  %v631_v4 = vunpack.c.l.bf16 %v4898_v60  ;;  %v678_v7 = vcombine.low %v624_v61, %v625_v62  ;;  %v4909_v12 = vsub.s32 %v684_v11, %v4805_v21  ;;  %v4374_v61 = vld [vmem:[%s6423_s1 + $0x160] sm:$0xff]   ;;  %v4388_v11 = vld [vmem:[%s6423_s1 + $0x108] sm:$0xff]  }
  0x15   :  { %3725 = vmatpush3.bf16.msra.mxu1 %v4349_v20  ;;  %3704 = vmatprep.subr.bf16.mxu0 %v4350_v22  ;;  %v679_v8 = vcombine.low %v626_v63, %v627_v0  ;;  %v680_v9 = vcombine.low %v628_v1, %v629_v2  ;;  %v4375_v62 = vld [vmem:[%s6423_s1 + $0x1e0] sm:$0xff]   ;;  %v4378_v1 = vld [vmem:[%s6423_s1 + $0x158] sm:$0xff]  }
  0x16   :  { %3726 = vmatprep.subr.bf16.mxu1 %v4351_v23  ;;  %v681_v10 = vcombine.low %v630_v3, %v631_v4  ;;  %v688_v13 = vrot.slane %v678_v7, %v4909_v12  ;;  %v4376_v63 = vld [vmem:[%s6423_s1 + $0x120] sm:$0xff]   ;;  %v4379_v2 = vld [vmem:[%s6423_s1 + $0x1d8] sm:$0xff]   ;;  %v4384_v7 = vld [vmem:[%s6423_s1 + $0x110] sm:$0xff]  }
  0x17   :  { %v695_v14 = vrot.slane %v679_v8, %v4909_v12  ;;  %v702_v15 = vrot.slane %v680_v9, %v4909_v12  ;;  %v4377_v0 = vld [vmem:[%s6423_s1 + $0x1a0] sm:$0xff]   ;;  %v4380_v3 = vld [vmem:[%s6423_s1 + $0x118] sm:$0xff]   ;;  %v4385_v8 = vld [vmem:[%s6423_s1 + $0x190] sm:$0xff]  }
  0x18   :  { %3705 = vmatpush3.bf16.msra.mxu0 %v4352_v24  ;;  %v709_v16 = vrot.slane %v681_v10, %v4909_v12  ;;  %v4381_v4 = vld [vmem:[%s6423_s1 + $0x198] sm:$0xff]   ;;  %v4386_v9 = vld [vmem:[%s6423_s1 + $0x148] sm:$0xff]  }
  0x19   :  { %3727 = vmatpush3.bf16.msra.mxu1 %v4353_v25  ;;  %3706 = vmatprep.subr.bf16.mxu0 %v4354_v27  ;;  %v710_v17 = vcombine.low %v688_v13, %v695_v14  ;;  %v4387_v10 = vld [vmem:[%s6423_s1 + $0x1c8] sm:$0xff]   ;;  %v4390_v14 = vld [vmem:[%s6423_s1 + $0x140] sm:$0xff]  }
  0x1a   :  { %3728 = vmatprep.subr.bf16.mxu1 %v4355_v29  ;;  %v711_v18 = vcombine.low %v702_v15, %v709_v16  ;;  %v4364_v29 = vld [vmem:[%s6423_s1 + $0x138] sm:$0xff]   ;;  %v4389_v13 = vld [vmem:[%s6423_s1 + $0x188] sm:$0xff]   ;;  %v4391_v15 = vld [vmem:[%s6423_s1 + $0x1c0] sm:$0xff]  }
  0x1b   :  { %v718_v19 = vrot.slane %v710_v17, %v4909_v12  ;;  %v4392_v16 = vld [vmem:[%s6423_s1 + $0x100] sm:$0xff]  }
  0x1c   :  { %3707 = vmatpush3.bf16.msra.mxu0 %v4356_v31  ;;  %v725_v20 = vrot.slane %v711_v18, %v4909_v12  ;;  %v4365_v31 = vld [vmem:[%s6423_s1 + $0x1b8] sm:$0xff]   ;;  %v4393_v17 = vld [vmem:[%s6423_s1 + $0x180] sm:$0xff]  }
  0x1d   :  { %3729 = vmatpush3.bf16.msra.mxu1 %v4357_v33  ;;  %3708 = vmatprep.subr.bf16.mxu0 %v4358_v35 }
  0x1e   :  { %3730 = vmatprep.subr.bf16.mxu1 %v4359_v37  ;;  %v726_v22 = vcombine.low %v718_v19, %v725_v20  ;;  %v4394_v20 = vld [vmem:[%s6423_s1 + $0x278] sm:$0xff]  }
  0x20   :  { %3709 = vmatpush3.bf16.msra.mxu0 %v4360_v39  ;;  %v4917_v23 = vsub.f32 %v22_v42, %v726_v22  ;;  %v4395_v22 = vld [vmem:[%s6423_s1 + $0x2f8] sm:$0xff]  }
  0x21   :  { %3731 = vmatpush3.bf16.msra.mxu1 %v4361_v41  ;;  %3738 = vmatprep.subr.bf16.mxu0 %v4362_v43  ;;  %v4366_v43 = vld [vmem:[%s6423_s1 + $0x170] sm:$0xff]  }
  0x22   :  { %3760 = vmatprep.subr.bf16.mxu1 %v4363_v52  ;;  %v867_v21 = vrot.slane %v4917_v23, %v4826_v28  ;;  %v875_v24 = vrot.slane %v4917_v23, %v4838_v32  ;;  %v863_v25 = vrot.slane %v4917_v23, %v4820_v26  ;;  %v871_v27 = vrot.slane %v4917_v23, %v4832_v30  ;;  %v4373_v52 = vld [vmem:[%s6423_s1 + $0x1a8] sm:$0xff]  }
  0x23   :  { %v883_v33 = vrot.slane %v4917_v23, %v4850_v36  ;;  %v891_v35 = vrot.slane %v4917_v23, %v4862_v40  ;;  %v879_v18 = vrot.slane %v4917_v23, %v4844_v34  ;;  %v887_v19 = vrot.slane %v4917_v23, %v4856_v38  ;;  %v4397_v23 = vld [vmem:[%s6423_s1 + $0x2b8] sm:$0xff]  }
  0x24   :  { %v996_v37 = vpack.c.bf16 %v867_v21, %v867_v21  ;;  %v998_v39 = vpack.c.bf16 %v875_v24, %v875_v24  ;;  %v995_v41 = vpack.c.bf16 %v863_v25, %v863_v25  ;;  %v997_v42 = vpack.c.bf16 %v871_v27, %v871_v27  ;;  %v4396_v21 = vld [vmem:[%s6423_s1 + $0x238] sm:$0xff]   ;;  %v4398_v27 = vld [vmem:[%s6423_s1 + $0x270] sm:$0xff]  }
  0x25   :  { %v1000_v46 = vpack.c.bf16 %v883_v33, %v883_v33  ;;  %v1002_v47 = vpack.c.bf16 %v891_v35, %v891_v35  ;;  %v999_v24 = vpack.c.bf16 %v879_v18, %v879_v18  ;;  %v1001_v25 = vpack.c.bf16 %v887_v19, %v887_v19  ;;  %v4401_v33 = vld [vmem:[%s6423_s1 + $0x2b0] sm:$0xff]   ;;  %v4402_v35 = vld [vmem:[%s6423_s1 + $0x268] sm:$0xff]  }
  0x26   :  { %2350 = vmatprep.mubr.bf16.mxu0 %v996_v37  ;;  %2390 = vmatprep.mubr.bf16.mxu1 %v998_v39  ;;  %v4403_v37 = vld [vmem:[%s6423_s1 + $0x2e8] sm:$0xff]  }
  0x27   :  { %2351 = vmatmul.mubr.bf16.vlgmr.msra.gmra.mxu0 %v995_v41  ;;  %2391 = vmatmul.mubr.bf16.vlgmr.msra.gmra.mxu1 %v997_v42  ;;  %v4404_v39 = vld [vmem:[%s6423_s1 + $0x228] sm:$0xff]  }
  0x28   :  { %3739 = vmatpush3.bf16.msra.mxu0 %v4364_v29  ;;  %3761 = vmatpush3.bf16.msra.mxu1 %v4365_v31  ;;  %v4399_v29 = vld [vmem:[%s6423_s1 + $0x2f0] sm:$0xff]   ;;  %v4405_v41 = vld [vmem:[%s6423_s1 + $0x2a8] sm:$0xff]  }
  0x29   :  { %3740 = vmatprep.subr.bf16.mxu0 %v4366_v43  ;;  %3762 = vmatprep.subr.bf16.mxu1 %v4367_v44  ;;  %v4400_v31 = vld [vmem:[%s6423_s1 + $0x230] sm:$0xff]   ;;  %v5064_v42 = vld [vmem:[%s6422_s0 + $0x8] sm:$0xff]  ;;  %v4406_v43 = vld [vmem:[%s6423_s1 + $0x260] sm:$0xff]  }
  0x2a   :  { %2430 = vmatprep.mubr.bf16.mxu0 %v1000_v46  ;;  %2470 = vmatprep.mubr.bf16.mxu1 %v1002_v47  ;;  %v497_v44 = vrot.slane %v5064_v42, %v4820_v26  ;;  %v505_v46 = vrot.slane %v5064_v42, %v4832_v30  ;;  %v4407_v47 = vld [vmem:[%s6423_s1 + $0x2e0] sm:$0xff]  }
  0x2c   :  { %3741 = vmatpush3.bf16.msra.mxu0 %v4368_v45  ;;  %3763 = vmatpush3.bf16.msra.mxu1 %v4369_v48  ;;  %v501_v45 = vrot.slane %v5064_v42, %v4826_v28  ;;  %v509_v48 = vrot.slane %v5064_v42, %v4838_v32 }
  0x2d   :  { %3742 = vmatprep.subr.bf16.mxu0 %v4370_v49  ;;  %3764 = vmatprep.subr.bf16.mxu1 %v4371_v50  ;;  %v513_v49 = vrot.slane %v5064_v42, %v4844_v34  ;;  %v517_v50 = vrot.slane %v5064_v42, %v4850_v36 }
  0x30   :  { %3743 = vmatpush3.bf16.msra.mxu0 %v4372_v51  ;;  %3765 = vmatpush3.bf16.msra.mxu1 %v4373_v52  ;;  %v4408_v51 = vld [vmem:[%s6423_s1 + $0x220] sm:$0xff]   ;;  %v521_v52 = vrot.slane %v5064_v42, %v4856_v38 }
  0x31   :  { %3744 = vmatprep.subr.bf16.mxu0 %v4374_v61  ;;  %3766 = vmatprep.subr.bf16.mxu1 %v4375_v62  ;;  %v525_v61 = vrot.slane %v5064_v42, %v4862_v40  ;;  %v5091_v62 = vpack.c.bf16 %v497_v44, %v497_v44  ;;  %v4419_v44 = vld [vmem:[%s6423_s1 + $0x2c8] sm:$0xff]  }
  0x34   :  { %3745 = vmatpush3.bf16.msra.mxu0 %v4376_v63  ;;  %3767 = vmatpush3.bf16.msra.mxu1 %v4377_v0  ;;  %v5093_v63 = vpack.c.bf16 %v501_v45, %v501_v45  ;;  %v4409_v0 = vld [vmem:[%s6423_s1 + $0x2a0] sm:$0xff]  }
  0x35   :  { %3746 = vmatprep.subr.bf16.mxu0 %v4378_v1  ;;  %3768 = vmatprep.subr.bf16.mxu1 %v4379_v2  ;;  %v5098_v1 = vpack.c.bf16 %v505_v46, %v505_v46  ;;  %v5100_v2 = vpack.c.bf16 %v509_v48, %v509_v48  ;;  %v4420_v46 = vld [vmem:[%s6423_s1 + $0x208] sm:$0xff]  }
  0x36   :  { %v4421_v48 = vld [vmem:[%s6423_s1 + $0x288] sm:$0xff]  }
  0x38   :  { %3747 = vmatpush3.bf16.msra.mxu0 %v4380_v3  ;;  %3769 = vmatpush3.bf16.msra.mxu1 %v4381_v4  ;;  %v5102_v3 = vpack.c.bf16 %v513_v49, %v513_v49  ;;  %v5104_v4 = vpack.c.bf16 %v517_v50, %v517_v50  ;;  %v4422_v49 = vld [vmem:[%s6423_s1 + $0x240] sm:$0xff]  }
  0x39   :  { %3748 = vmatprep.subr.bf16.mxu0 %v4382_v5  ;;  %3770 = vmatprep.subr.bf16.mxu1 %v4383_v6  ;;  %v4410_v5 = vld [vmem:[%s6423_s1 + $0x258] sm:$0xff]   ;;  %v5109_v6 = vpack.c.bf16 %v521_v52, %v521_v52  ;;  %v4424_v52 = vld [vmem:[%s6423_s1 + $0x200] sm:$0xff]  }
  0x3c   :  { %3749 = vmatpush3.bf16.msra.mxu0 %v4384_v7  ;;  %3771 = vmatpush3.bf16.msra.mxu1 %v4385_v8  ;;  %v5111_v7 = vpack.c.bf16 %v525_v61, %v525_v61  ;;  %v632_v8 = vunpack.c.l.bf16 %v5091_v62 }
  0x3d   :  { %3750 = vmatprep.subr.bf16.mxu0 %v4386_v9  ;;  %3772 = vmatprep.subr.bf16.mxu1 %v4387_v10  ;;  %v633_v9 = vunpack.c.l.bf16 %v5093_v63  ;;  %v4411_v10 = vld [vmem:[%s6423_s1 + $0x2d8] sm:$0xff]  }
  0x3e   :  { %v639_v18 = vunpack.c.l.bf16 %v5111_v7 }
  0x3f   :  { %v727_v19 = vcombine.low %v632_v8, %v633_v9 }
  0x40   :  { %3751 = vmatpush3.bf16.msra.mxu0 %v4388_v11  ;;  %3773 = vmatpush3.bf16.msra.mxu1 %v4389_v13  ;;  %v634_v11 = vunpack.c.l.bf16 %v5098_v1  ;;  %v635_v13 = vunpack.c.l.bf16 %v5100_v2 }
  0x41   :  { %3752 = vmatprep.subr.bf16.mxu0 %v4390_v14  ;;  %3774 = vmatprep.subr.bf16.mxu1 %v4391_v15  ;;  %v636_v14 = vunpack.c.l.bf16 %v5102_v3  ;;  %v637_v15 = vunpack.c.l.bf16 %v5104_v4 }
  0x44   :  { %3753 = vmatpush3.bf16.msra.mxu0 %v4392_v16  ;;  %3775 = vmatpush3.bf16.msra.mxu1 %v4393_v17  ;;  %v4412_v16 = vld [vmem:[%s6423_s1 + $0x218] sm:$0xff]   ;;  %v638_v17 = vunpack.c.l.bf16 %v5109_v6 }
  0x45   :  { %3782 = vmatprep.subr.bf16.mxu0 %v4394_v20  ;;  %3804 = vmatprep.subr.bf16.mxu1 %v4395_v22  ;;  %v4413_v20 = vld [vmem:[%s6423_s1 + $0x298] sm:$0xff]   ;;  %v728_v22 = vcombine.low %v634_v11, %v635_v13 }
  0x47   :  { %2431 = vmatmul.mubr.bf16.vlgmr.msra.gmra.mxu0 %v999_v24  ;;  %2471 = vmatmul.mubr.bf16.vlgmr.msra.gmra.mxu1 %v1001_v25  ;;  %v4414_v24 = vld [vmem:[%s6423_s1 + $0x250] sm:$0xff]   ;;  %v730_v25 = vcombine.low %v638_v17, %v639_v18 }
  0x48   :  { %3783 = vmatpush3.bf16.msra.mxu0 %v4396_v21  ;;  %3805 = vmatpush3.bf16.msra.mxu1 %v4397_v23  ;;  %v729_v21 = vcombine.low %v636_v14, %v637_v15  ;;  %v737_v23 = vrot.slane %v727_v19, %v4909_v12  ;;  %v4428_v15 = vld [vmem:[%s6423_s1 + $0x338] sm:$0xff]  }
  0x49   :  { %3784 = vmatprep.subr.bf16.mxu0 %v4398_v27  ;;  %3806 = vmatprep.subr.bf16.mxu1 %v4399_v29  ;;  %v4415_v27 = vld [vmem:[%s6423_s1 + $0x2d0] sm:$0xff]   ;;  %v744_v29 = vrot.slane %v728_v22, %v4909_v12 }
  0x4a   :  { %v4430_v22 = vld [vmem:[%s6423_s1 + $0x370] sm:$0xff]  }
  0x4c   :  { %3785 = vmatpush3.bf16.msra.mxu0 %v4400_v31  ;;  %3807 = vmatpush3.bf16.msra.mxu1 %v4401_v33  ;;  %v751_v31 = vrot.slane %v729_v21, %v4909_v12  ;;  %v4416_v33 = vld [vmem:[%s6423_s1 + $0x210] sm:$0xff]  }
  0x4d   :  { %3786 = vmatprep.subr.bf16.mxu0 %v4402_v35  ;;  %3808 = vmatprep.subr.bf16.mxu1 %v4403_v37  ;;  %v758_v35 = vrot.slane %v730_v25, %v4909_v12  ;;  %v4417_v37 = vld [vmem:[%s6423_s1 + $0x290] sm:$0xff]  }
  0x4e   :  { %v4431_v21 = vld [vmem:[%s6423_s1 + $0x3f0] sm:$0xff]  }
  0x50   :  { %3787 = vmatpush3.bf16.msra.mxu0 %v4404_v39  ;;  %3809 = vmatpush3.bf16.msra.mxu1 %v4405_v41  ;;  %v759_v39 = vcombine.low %v737_v23, %v744_v29  ;;  %v4418_v41 = vld [vmem:[%s6423_s1 + $0x248] sm:$0xff]  }
  0x51   :  { %3788 = vmatprep.subr.bf16.mxu0 %v4406_v43  ;;  %3810 = vmatprep.subr.bf16.mxu1 %v4407_v47  ;;  %v760_v43 = vcombine.low %v751_v31, %v758_v35  ;;  %v4434_v29 = vld [vmem:[%s6423_s1 + $0x368] sm:$0xff]  }
  0x52   :  { %v767_v45 = vrot.slane %v759_v39, %v4909_v12  ;;  %v4435_v31 = vld [vmem:[%s6423_s1 + $0x3e8] sm:$0xff]   ;;  %v4439_v39 = vld [vmem:[%s6423_s1 + $0x3e0] sm:$0xff]  }
  0x53   :  { %v774_v47 = vrot.slane %v760_v43, %v4909_v12  ;;  %v4437_v35 = vld [vmem:[%s6423_s1 + $0x3a8] sm:$0xff]   ;;  %v4441_v43 = vld [vmem:[%s6423_s1 + $0x3a0] sm:$0xff]  }
  0x54   :  { %3789 = vmatpush3.bf16.msra.mxu0 %v4408_v51  ;;  %3811 = vmatpush3.bf16.msra.mxu1 %v4409_v0  ;;  %v4423_v51 = vld [vmem:[%s6423_s1 + $0x2c0] sm:$0xff]  }
  0x55   :  { %3790 = vmatprep.subr.bf16.mxu0 %v4410_v5  ;;  %3812 = vmatprep.subr.bf16.mxu1 %v4411_v10  ;;  %v775_v50 = vcombine.low %v767_v45, %v774_v47  ;;  %v4425_v0 = vld [vmem:[%s6423_s1 + $0x280] sm:$0xff]   ;;  %v4427_v10 = vld [vmem:[%s6423_s1 + $0x3f8] sm:$0xff]  }
  0x56   :  { %v4443_v45 = vld [vmem:[%s6423_s1 + $0x3d8] sm:$0xff]  }
  0x57   :  { %v5170_v61 = vsub.f32 %v5064_v42, %v775_v50  ;;  %v4426_v42 = vld [vmem:[%s6423_s1 + $0x378] sm:$0xff]   ;;  %v4448_v50 = vld [vmem:[%s6423_s1 + $0x310] sm:$0xff]  }
  0x58   :  { %3791 = vmatpush3.bf16.msra.mxu0 %v4412_v16  ;;  %3813 = vmatpush3.bf16.msra.mxu1 %v4413_v20  ;;  %v4429_v20 = vld [vmem:[%s6423_s1 + $0x3b8] sm:$0xff]  }
  0x59   :  { %3792 = vmatprep.subr.bf16.mxu0 %v4414_v24  ;;  %3814 = vmatprep.subr.bf16.mxu1 %v4415_v27  ;;  %v899_v5 = vrot.slane %v5170_v61, %v4826_v28  ;;  %v895_v8 = vrot.slane %v5170_v61, %v4820_v26  ;;  %v907_v9 = vrot.slane %v5170_v61, %v4838_v32  ;;  %v4432_v24 = vld [vmem:[%s6423_s1 + $0x330] sm:$0xff]   ;;  %v4445_v47 = vld [vmem:[%s6423_s1 + $0x398] sm:$0xff]  }
  0x5a   :  { %v903_v11 = vrot.slane %v5170_v61, %v4832_v30  ;;  %v915_v16 = vrot.slane %v5170_v61, %v4850_v36  ;;  %v923_v17 = vrot.slane %v5170_v61, %v4862_v40  ;;  %v4433_v27 = vld [vmem:[%s6423_s1 + $0x3b0] sm:$0xff]  }
  0x5b   :  { %v1004_v13 = vpack.c.bf16 %v899_v5, %v899_v5  ;;  %v1006_v14 = vpack.c.bf16 %v907_v9, %v907_v9  ;;  %v1003_v18 = vpack.c.bf16 %v895_v8, %v895_v8  ;;  %v4452_v5 = vld [vmem:[%s6423_s1 + $0x308] sm:$0xff]   ;;  %v4454_v9 = vld [vmem:[%s6423_s1 + $0x340] sm:$0xff]  }
  0x5c   :  { %3793 = vmatpush3.bf16.msra.mxu0 %v4416_v33  ;;  %3815 = vmatpush3.bf16.msra.mxu1 %v4417_v37  ;;  %v1005_v19 = vpack.c.bf16 %v903_v11, %v903_v11  ;;  %v1008_v25 = vpack.c.bf16 %v915_v16, %v915_v16  ;;  %v1010_v23 = vpack.c.bf16 %v923_v17, %v923_v17  ;;  %v4436_v33 = vld [vmem:[%s6423_s1 + $0x328] sm:$0xff]   ;;  %v4438_v37 = vld [vmem:[%s6423_s1 + $0x360] sm:$0xff]   ;;  %v4459_v16 = vld [vmem:[%s6423_s1 + $0x4f8] sm:$0xff]  }
  0x5d   :  { %3794 = vmatprep.subr.bf16.mxu0 %v4418_v41  ;;  %3816 = vmatprep.subr.bf16.mxu1 %v4419_v44  ;;  %v4440_v41 = vld [vmem:[%s6423_s1 + $0x320] sm:$0xff]   ;;  %v4442_v44 = vld [vmem:[%s6423_s1 + $0x358] sm:$0xff]   ;;  %v4453_v8 = vld [vmem:[%s6423_s1 + $0x388] sm:$0xff]  }
  0x5e   :  { %2510 = vmatprep.mubr.bf16.mxu0 %v1004_v13  ;;  %2550 = vmatprep.mubr.bf16.mxu1 %v1006_v14  ;;  %v4457_v11 = vld [vmem:[%s6423_s1 + $0x380] sm:$0xff]   ;;  %v911_v13 = vrot.slane %v5170_v61, %v4844_v34  ;;  %v919_v14 = vrot.slane %v5170_v61, %v4856_v38  ;;  %v4460_v17 = vld [vmem:[%s6423_s1 + $0x438] sm:$0xff]  }
  0x5f   :  { %v4461_v61 = vld [vmem:[%s6423_s1 + $0x4b8] sm:$0xff]  }
  0x60   :  { %3795 = vmatpush3.bf16.msra.mxu0 %v4420_v46  ;;  %3817 = vmatpush3.bf16.msra.mxu1 %v4421_v48  ;;  %v4444_v46 = vld [vmem:[%s6423_s1 + $0x318] sm:$0xff]   ;;  %v4446_v48 = vld [vmem:[%s6423_s1 + $0x350] sm:$0xff]  }
  0x61   :  { %3796 = vmatprep.subr.bf16.mxu0 %v4422_v49  ;;  %3818 = vmatprep.subr.bf16.mxu1 %v4423_v51  ;;  %v4447_v49 = vld [vmem:[%s6423_s1 + $0x3d0] sm:$0xff]  }
  0x62   :  { %v4449_v51 = vld [vmem:[%s6423_s1 + $0x390] sm:$0xff]  }
  0x64   :  { %3797 = vmatpush3.bf16.msra.mxu0 %v4424_v52  ;;  %3819 = vmatpush3.bf16.msra.mxu1 %v4425_v0  ;;  %v4450_v52 = vld [vmem:[%s6423_s1 + $0x348] sm:$0xff]  }
  0x65   :  { %3826 = vmatprep.subr.bf16.mxu0 %v4426_v42  ;;  %3848 = vmatprep.subr.bf16.mxu1 %v4427_v10  ;;  %v4451_v0 = vld [vmem:[%s6423_s1 + $0x3c8] sm:$0xff]   ;;  %v4455_v42 = vld [vmem:[%s6423_s1 + $0x3c0] sm:$0xff]  }
  0x66   :  { %v4456_v10 = vld [vmem:[%s6423_s1 + $0x300] sm:$0xff]  }
  0x67   :  { %2511 = vmatmul.mubr.bf16.vlgmr.msra.gmra.mxu0 %v1003_v18  ;;  %2551 = vmatmul.mubr.bf16.vlgmr.msra.gmra.mxu1 %v1005_v19  ;;  %v1007_v18 = vpack.c.bf16 %v911_v13, %v911_v13  ;;  %v1009_v19 = vpack.c.bf16 %v919_v14, %v919_v14  ;;  %v4475_v14 = vld [vmem:[%s6423_s1 + $0x4d8] sm:$0xff]  }
  0x68   :  { %3827 = vmatpush3.bf16.msra.mxu0 %v4428_v15  ;;  %3849 = vmatpush3.bf16.msra.mxu1 %v4429_v20  ;;  %v4458_v15 = vld [vmem:[%s6423_s1 + $0x478] sm:$0xff]   ;;  %v4462_v20 = vld [vmem:[%s6423_s1 + $0x470] sm:$0xff]  }
  0x69   :  { %3828 = vmatprep.subr.bf16.mxu0 %v4430_v22  ;;  %3850 = vmatprep.subr.bf16.mxu1 %v4431_v21  ;;  %v4463_v22 = vld [vmem:[%s6423_s1 + $0x4f0] sm:$0xff]  }
  0x6a   :  { %2590 = vmatprep.mubr.bf16.mxu0 %v1008_v25  ;;  %2630 = vmatprep.mubr.bf16.mxu1 %v1010_v23  ;;  %v4464_v21 = vld [vmem:[%s6423_s1 + $0x430] sm:$0xff]   ;;  %v4466_v25 = vld [vmem:[%s6423_s1 + $0x468] sm:$0xff]  }
  0x6b   :  { %v4467_v23 = vld [vmem:[%s6423_s1 + $0x4e8] sm:$0xff]  }
  0x6c   :  { %3829 = vmatpush3.bf16.msra.mxu0 %v4432_v24  ;;  %3851 = vmatpush3.bf16.msra.mxu1 %v4433_v27  ;;  %v4465_v24 = vld [vmem:[%s6423_s1 + $0x4b0] sm:$0xff]   ;;  %v4468_v27 = vld [vmem:[%s6423_s1 + $0x428] sm:$0xff]  }
  0x6d   :  { %3830 = vmatprep.subr.bf16.mxu0 %v4434_v29  ;;  %3852 = vmatprep.subr.bf16.mxu1 %v4435_v31  ;;  %v4469_v29 = vld [vmem:[%s6423_s1 + $0x4a8] sm:$0xff]   ;;  %v5326_v31 = vld [vmem:[%s6422_s0 + $0x10] sm:$0xff] }
  0x70   :  { %3831 = vmatpush3.bf16.msra.mxu0 %v4436_v33  ;;  %3853 = vmatpush3.bf16.msra.mxu1 %v4437_v35  ;;  %v4470_v33 = vld [vmem:[%s6423_s1 + $0x460] sm:$0xff]   ;;  %v529_v35 = vrot.slane %v5326_v31, %v4820_v26 }
  0x71   :  { %3832 = vmatprep.subr.bf16.mxu0 %v4438_v37  ;;  %3854 = vmatprep.subr.bf16.mxu1 %v4439_v39  ;;  %v533_v37 = vrot.slane %v5326_v31, %v4826_v28  ;;  %v537_v39 = vrot.slane %v5326_v31, %v4832_v30 }
  0x74   :  { %3833 = vmatpush3.bf16.msra.mxu0 %v4440_v41  ;;  %3855 = vmatpush3.bf16.msra.mxu1 %v4441_v43  ;;  %v4471_v41 = vld [vmem:[%s6423_s1 + $0x4e0] sm:$0xff]   ;;  %v541_v43 = vrot.slane %v5326_v31, %v4838_v32 }
  0x75   :  { %3834 = vmatprep.subr.bf16.mxu0 %v4442_v44  ;;  %3856 = vmatprep.subr.bf16.mxu1 %v4443_v45  ;;  %v545_v44 = vrot.slane %v5326_v31, %v4844_v34  ;;  %v549_v45 = vrot.slane %v5326_v31, %v4850_v36 }
  0x78   :  { %3835 = vmatpush3.bf16.msra.mxu0 %v4444_v46  ;;  %3857 = vmatpush3.bf16.msra.mxu1 %v4445_v47  ;;  %v4472_v46 = vld [vmem:[%s6423_s1 + $0x420] sm:$0xff]   ;;  %v553_v47 = vrot.slane %v5326_v31, %v4856_v38 }
  0x79   :  { %3836 = vmatprep.subr.bf16.mxu0 %v4446_v48  ;;  %3858 = vmatprep.subr.bf16.mxu1 %v4447_v49  ;;  %v557_v48 = vrot.slane %v5326_v31, %v4862_v40  ;;  %v5353_v49 = vpack.c.bf16 %v529_v35, %v529_v35 }
  0x7c   :  { %3837 = vmatpush3.bf16.msra.mxu0 %v4448_v50  ;;  %3859 = vmatpush3.bf16.msra.mxu1 %v4449_v51  ;;  %v5355_v50 = vpack.c.bf16 %v533_v37, %v533_v37  ;;  %v4473_v51 = vld [vmem:[%s6423_s1 + $0x4a0] sm:$0xff]  }
  0x7d   :  { %3838 = vmatprep.subr.bf16.mxu0 %v4450_v52  ;;  %3860 = vmatprep.subr.bf16.mxu1 %v4451_v0  ;;  %v5360_v52 = vpack.c.bf16 %v537_v39, %v537_v39  ;;  %v5362_v0 = vpack.c.bf16 %v541_v43, %v541_v43  ;;  %v4480_v39 = vld [vmem:[%s6423_s1 + $0x410] sm:$0xff]  }
  0x7e   :  { %v641_v13 = vunpack.c.l.bf16 %v5355_v50  ;;  %v4481_v43 = vld [vmem:[%s6423_s1 + $0x490] sm:$0xff]  }
  0x80   :  { %3839 = vmatpush3.bf16.msra.mxu0 %v4452_v5  ;;  %3861 = vmatpush3.bf16.msra.mxu1 %v4453_v8  ;;  %v5364_v5 = vpack.c.bf16 %v545_v44, %v545_v44  ;;  %v5366_v8 = vpack.c.bf16 %v549_v45, %v549_v45  ;;  %v4482_v45 = vld [vmem:[%s6423_s1 + $0x448] sm:$0xff]  }
  0x81   :  { %3840 = vmatprep.subr.bf16.mxu0 %v4454_v9  ;;  %3862 = vmatprep.subr.bf16.mxu1 %v4455_v42  ;;  %v4474_v9 = vld [vmem:[%s6423_s1 + $0x458] sm:$0xff]   ;;  %v5371_v42 = vpack.c.bf16 %v553_v47, %v553_v47  ;;  %v5414_v47 = vld [vmem:[%s6423_s1 + $0x4c8] sm:$0xff]  }
  0x82   :  { %6467 = vst [vmem:[#allocation6_spill] sm:$0xff] %v5364_v5 }
  0x83   :  { %6468 = vst [vmem:[#allocation7_spill] sm:$0xff] %v5371_v42 }
  0x84   :  { %3841 = vmatpush3.bf16.msra.mxu0 %v4456_v10  ;;  %3863 = vmatpush3.bf16.msra.mxu1 %v4457_v11  ;;  %v5373_v10 = vpack.c.bf16 %v557_v48, %v557_v48  ;;  %v640_v11 = vunpack.c.l.bf16 %v5353_v49 }
  0x85   :  { %3870 = vmatprep.subr.bf16.mxu0 %v4458_v15  ;;  %3892 = vmatprep.subr.bf16.mxu1 %v4459_v16  ;;  %v642_v15 = vunpack.c.l.bf16 %v5360_v52  ;;  %v643_v16 = vunpack.c.l.bf16 %v5362_v0 }
  0x87   :  { %2591 = vmatmul.mubr.bf16.vlgmr.msra.gmra.mxu0 %v1007_v18  ;;  %2631 = vmatmul.mubr.bf16.vlgmr.msra.gmra.mxu1 %v1009_v19  ;;  %v645_v18 = vunpack.c.l.bf16 %v5366_v8  ;;  %v4476_v19 = vld [vmem:[%s6423_s1 + $0x418] sm:$0xff]  }
  0x88   :  { %3871 = vmatpush3.bf16.msra.mxu0 %v4460_v17  ;;  %3893 = vmatpush3.bf16.msra.mxu1 %v4461_v61  ;;  %v644_v17 = vunpack.c.l.bf16 %v5364_v5  ;;  %v646_v61 = vunpack.c.l.bf16 %v5371_v42  ;;  %v5625_v42 = vld [vmem:[%s6423_s1 + $0x508] sm:$0xff]  }
  0x89   :  { %3872 = vmatprep.subr.bf16.mxu0 %v4462_v20  ;;  %3894 = vmatprep.subr.bf16.mxu1 %v4463_v22  ;;  %v647_v20 = vunpack.c.l.bf16 %v5373_v10  ;;  %v776_v22 = vcombine.low %v640_v11, %v641_v13  ;;  %v5426_v11 = vld [vmem:[%s6423_s1 + $0x488] sm:$0xff]   ;;  %v5431_v13 = vld [vmem:[%s6423_s1 + $0x440] sm:$0xff]   ;;  %6478 = vst [vmem:[#allocation17_spill] sm:$0xff] %v5625_v42 }
  0x8a   :  { %v5630_v5 = vld [vmem:[%s6423_s1 + $0x588] sm:$0xff]  }
  0x8b   :  { %6479 = vst [vmem:[#allocation18_spill] sm:$0xff] %v5630_v5 }
  0x8c   :  { %3873 = vmatpush3.bf16.msra.mxu0 %v4464_v21  ;;  %3895 = vmatpush3.bf16.msra.mxu1 %v4465_v24  ;;  %v4477_v21 = vld [vmem:[%s6423_s1 + $0x498] sm:$0xff]   ;;  %v777_v24 = vcombine.low %v642_v15, %v643_v16  ;;  %v5437_v15 = vld [vmem:[%s6423_s1 + $0x4c0] sm:$0xff]  }
  0x8d   :  { %3874 = vmatprep.subr.bf16.mxu0 %v4466_v25  ;;  %3896 = vmatprep.subr.bf16.mxu1 %v4467_v23  ;;  %v778_v25 = vcombine.low %v644_v17, %v645_v18  ;;  %v4478_v23 = vld [vmem:[%s6423_s1 + $0x450] sm:$0xff]   ;;  %v5442_v16 = vld [vmem:[%s6423_s1 + $0x400] sm:$0xff]  }
  0x8e   :  { %v793_v35 = vrot.slane %v777_v24, %v4909_v12  ;;  %v5450_v18 = vld [vmem:[%s6423_s1 + $0x480] sm:$0xff]  }
  0x8f   :  { %v800_v37 = vrot.slane %v778_v25, %v4909_v12 }
  0x90   :  { %3875 = vmatpush3.bf16.msra.mxu0 %v4468_v27  ;;  %3897 = vmatpush3.bf16.msra.mxu1 %v4469_v29  ;;  %v779_v27 = vcombine.low %v646_v61, %v647_v20  ;;  %v786_v29 = vrot.slane %v776_v22, %v4909_v12  ;;  %v5470_v22 = vld [vmem:[%s6423_s1 + $0x5f8] sm:$0xff]  }
  0x91   :  { %3876 = vmatprep.subr.bf16.mxu0 %v4470_v33  ;;  %3898 = vmatprep.subr.bf16.mxu1 %v4471_v41  ;;  %v4479_v33 = vld [vmem:[%s6423_s1 + $0x4d0] sm:$0xff]  }
  0x92   :  { %v807_v41 = vrot.slane %v779_v27, %v4909_v12  ;;  %v808_v44 = vcombine.low %v786_v29, %v793_v35  ;;  %v5486_v35 = vld [vmem:[%s6423_s1 + $0x5b8] sm:$0xff]  }
  0x94   :  { %3877 = vmatpush3.bf16.msra.mxu0 %v4472_v46  ;;  %3899 = vmatpush3.bf16.msra.mxu1 %v4473_v51  ;;  %v809_v46 = vcombine.low %v800_v37, %v807_v41  ;;  %v816_v48 = vrot.slane %v808_v44, %v4909_v12  ;;  %v5420_v51 = vld [vmem:[%s6423_s1 + $0x408] sm:$0xff]   ;;  %v5493_v37 = vld [vmem:[%s6423_s1 + $0x570] sm:$0xff]  }
  0x95   :  { %3878 = vmatprep.subr.bf16.mxu0 %v4474_v9  ;;  %3900 = vmatprep.subr.bf16.mxu1 %v4475_v14  ;;  %v5517_v44 = vld [vmem:[%s6423_s1 + $0x568] sm:$0xff]  }
  0x96   :  { %v823_v9 = vrot.slane %v809_v46, %v4909_v12  ;;  %v5529_v46 = vld [vmem:[%s6423_s1 + $0x528] sm:$0xff]  }
  0x98   :  { %3879 = vmatpush3.bf16.msra.mxu0 %v4476_v19  ;;  %3901 = vmatpush3.bf16.msra.mxu1 %v4477_v21  ;;  %v824_v14 = vcombine.low %v816_v48, %v823_v9  ;;  %v5534_v48 = vld [vmem:[%s6423_s1 + $0x5a8] sm:$0xff]   ;;  %v5541_v9 = vld [vmem:[%s6423_s1 + $0x560] sm:$0xff]  }
  0x99   :  { %3880 = vmatprep.subr.bf16.mxu0 %v4478_v23  ;;  %3902 = vmatprep.subr.bf16.mxu1 %v4479_v33 }
  0x9a   :  { %v5445_v17 = vsub.f32 %v5326_v31, %v824_v14  ;;  %v5463_v31 = vld [vmem:[%s6423_s1 + $0x578] sm:$0xff]   ;;  %v5548_v14 = vld [vmem:[%s6423_s1 + $0x5e0] sm:$0xff]  }
  0x9c   :  { %3881 = vmatpush3.bf16.msra.mxu0 %v4480_v39  ;;  %3903 = vmatpush3.bf16.msra.mxu1 %v4481_v43  ;;  %v931_v19 = vrot.slane %v5445_v17, %v4826_v28  ;;  %v927_v61 = vrot.slane %v5445_v17, %v4820_v26  ;;  %v939_v20 = vrot.slane %v5445_v17, %v4838_v32  ;;  %v5477_v32 = vld [vmem:[%s6423_s1 + $0x538] sm:$0xff]   ;;  %v5510_v43 = vld [vmem:[%s6423_s1 + $0x5b0] sm:$0xff]  }
  0x9d   :  { %3882 = vmatprep.subr.bf16.mxu0 %v4482_v45  ;;  %3904 = vmatprep.subr.bf16.mxu1 %v5414_v47  ;;  %v935_v21 = vrot.slane %v5445_v17, %v4832_v30  ;;  %v947_v23 = vrot.slane %v5445_v17, %v4850_v36  ;;  %v955_v27 = vrot.slane %v5445_v17, %v4862_v40  ;;  %v5498_v36 = vld [vmem:[%s6423_s1 + $0x5f0] sm:$0xff]   ;;  %v5524_v45 = vld [vmem:[%s6423_s1 + $0x5e8] sm:$0xff]  }
  0x9e   :  { %v1012_v24 = vpack.c.bf16 %v931_v19, %v931_v19  ;;  %v1014_v25 = vpack.c.bf16 %v939_v20, %v939_v20  ;;  %v1011_v29 = vpack.c.bf16 %v927_v61, %v927_v61  ;;  %v5505_v40 = vld [vmem:[%s6423_s1 + $0x530] sm:$0xff]   ;;  %v5553_v19 = vld [vmem:[%s6423_s1 + $0x520] sm:$0xff]   ;;  %v5565_v20 = vld [vmem:[%s6423_s1 + $0x558] sm:$0xff]  }
  0x9f   :  { %v1013_v33 = vpack.c.bf16 %v935_v21, %v935_v21  ;;  %v1016_v39 = vpack.c.bf16 %v947_v23, %v947_v23  ;;  %v1018_v41 = vpack.c.bf16 %v955_v27, %v955_v27  ;;  %v5558_v61 = vld [vmem:[%s6423_s1 + $0x5a0] sm:$0xff]   ;;  %v5572_v21 = vld [vmem:[%s6423_s1 + $0x5d8] sm:$0xff]   ;;  %v5589_v23 = vld [vmem:[%s6423_s1 + $0x550] sm:$0xff]  }
  0xa0   :  { %3883 = vmatpush3.bf16.msra.mxu0 %v5420_v51  ;;  %3905 = vmatpush3.bf16.msra.mxu1 %v5426_v11  ;;  %6469 = vst [vmem:[#allocation8_spill] sm:$0xff] %v5572_v21  ;;  %6472 = vst [vmem:[#allocation11_spill] sm:$0xff] %v5589_v23  ;;  %v5596_v27 = vld [vmem:[%s6423_s1 + $0x5d0] sm:$0xff]  }
  0xa1   :  { %3884 = vmatprep.subr.bf16.mxu0 %v5431_v13  ;;  %3906 = vmatprep.subr.bf16.mxu1 %v5437_v15  ;;  %6473 = vst [vmem:[#allocation12_spill] sm:$0xff] %v5596_v27 }
  0xa2   :  { %2670 = vmatprep.mubr.bf16.mxu0 %v1012_v24  ;;  %2710 = vmatprep.mubr.bf16.mxu1 %v1014_v25  ;;  %v5577_v24 = vld [vmem:[%s6423_s1 + $0x518] sm:$0xff]  }
  0xa3   :  { %6470 = vst [vmem:[#allocation9_spill] sm:$0xff] %v5577_v24  ;;  %v5582_v25 = vld [vmem:[%s6423_s1 + $0x598] sm:$0xff]  }
  0xa4   :  { %3885 = vmatpush3.bf16.msra.mxu0 %v5442_v16  ;;  %3907 = vmatpush3.bf16.msra.mxu1 %v5450_v18  ;;  %6471 = vst [vmem:[#allocation10_spill] sm:$0xff] %v5582_v25 }
  0xa5   :  { %3914 = vmatprep.subr.bf16.mxu0 %v5463_v31  ;;  %3936 = vmatprep.subr.bf16.mxu1 %v5470_v22 }
  0xa7   :  { %2671 = vmatmul.mubr.bf16.vlgmr.msra.gmra.mxu0 %v1011_v29  ;;  %2711 = vmatmul.mubr.bf16.vlgmr.msra.gmra.mxu1 %v1013_v33  ;;  %v5601_v29 = vld [vmem:[%s6423_s1 + $0x510] sm:$0xff]  }
  0xa8   :  { %3915 = vmatpush3.bf16.msra.mxu0 %v5477_v32  ;;  %3937 = vmatpush3.bf16.msra.mxu1 %v5486_v35  ;;  %6474 = vst [vmem:[#allocation13_spill] sm:$0xff] %v5601_v29  ;;  %v5606_v33 = vld [vmem:[%s6423_s1 + $0x590] sm:$0xff]  }
  0xa9   :  { %3916 = vmatprep.subr.bf16.mxu0 %v5493_v37  ;;  %3938 = vmatprep.subr.bf16.mxu1 %v5498_v36  ;;  %6475 = vst [vmem:[#allocation14_spill] sm:$0xff] %v5606_v33 }
  0xaa   :  { %2750 = vmatprep.mubr.bf16.mxu0 %v1016_v39  ;;  %2790 = vmatprep.mubr.bf16.mxu1 %v1018_v41  ;;  %v5613_v39 = vld [vmem:[%s6423_s1 + $0x548] sm:$0xff]  }
  0xab   :  { %6476 = vst [vmem:[#allocation15_spill] sm:$0xff] %v5613_v39  ;;  %v5620_v41 = vld [vmem:[%s6423_s1 + $0x5c8] sm:$0xff]  }
  0xac   :  { %3917 = vmatpush3.bf16.msra.mxu0 %v5505_v40  ;;  %3939 = vmatpush3.bf16.msra.mxu1 %v5510_v43  ;;  %6477 = vst [vmem:[#allocation16_spill] sm:$0xff] %v5620_v41 }
  0xad   :  { %3918 = vmatprep.subr.bf16.mxu0 %v5517_v44  ;;  %3940 = vmatprep.subr.bf16.mxu1 %v5524_v45 }
  0xb0   :  { %3919 = vmatpush3.bf16.msra.mxu0 %v5529_v46  ;;  %3941 = vmatpush3.bf16.msra.mxu1 %v5534_v48 }
  0xb1   :  { %3920 = vmatprep.subr.bf16.mxu0 %v5541_v9  ;;  %3942 = vmatprep.subr.bf16.mxu1 %v5548_v14 }
  0xb4   :  { %3921 = vmatpush3.bf16.msra.mxu0 %v5553_v19  ;;  %3943 = vmatpush3.bf16.msra.mxu1 %v5558_v61 }
  0xb5   :  { %3922 = vmatprep.subr.bf16.mxu0 %v5565_v20  ;;  %3944 = vmatprep.subr.bf16.mxu1 %v5572_v21 }
  0xb8   :  { %3923 = vmatpush3.bf16.msra.mxu0 %v5577_v24  ;;  %3945 = vmatpush3.bf16.msra.mxu1 %v5582_v25  ;;  %v951_v25 = vrot.slane %v5445_v17, %v4856_v38 }
  0xb9   :  { %3924 = vmatprep.subr.bf16.mxu0 %v5589_v23  ;;  %3946 = vmatprep.subr.bf16.mxu1 %v5596_v27  ;;  %v5637_v27 = vld [vmem:[%s6423_s1 + $0x540] sm:$0xff]  }
  0xba   :  { %6480 = vst [vmem:[#allocation19_spill] sm:$0xff] %v5637_v27  ;;  %v5644_v23 = vld [vmem:[%s6423_s1 + $0x5c0] sm:$0xff]   ;;  %v1017_v38 = vpack.c.bf16 %v951_v25, %v951_v25 }
  0xbb   :  { %6481 = vst [vmem:[#allocation20_spill] sm:$0xff] %v5644_v23 }
  0xbc   :  { %3925 = vmatpush3.bf16.msra.mxu0 %v5601_v29  ;;  %3947 = vmatpush3.bf16.msra.mxu1 %v5606_v33  ;;  %v5649_v29 = vld [vmem:[%s6423_s1 + $0x500] sm:$0xff]   ;;  %v943_v33 = vrot.slane %v5445_v17, %v4844_v34  ;;  %v5667_v34 = vld [vmem:[%s6423_s1 + $0x678] sm:$0xff]  }
  0xbd   :  { %3926 = vmatprep.subr.bf16.mxu0 %v5613_v39  ;;  %3948 = vmatprep.subr.bf16.mxu1 %v5620_v41  ;;  %6482 = vst [vmem:[#allocation21_spill] sm:$0xff] %v5649_v29  ;;  %v5660_v41 = vld [vmem:[%s6423_s1 + $0x580] sm:$0xff]   ;;  %6484 = vst [vmem:[#allocation23_spill] sm:$0xff] %v5667_v34  ;;  %v5672_v17 = vld [vmem:[%s6423_s1 + $0x638] sm:$0xff]  }
  0xbe   :  { %6483 = vst [vmem:[#allocation22_spill] sm:$0xff] %v5660_v41  ;;  %v1015_v39 = vpack.c.bf16 %v943_v33, %v943_v33  ;;  %6485 = vst [vmem:[#allocation24_spill] sm:$0xff] %v5672_v17 }
  0xc0   :  { %3927 = vmatpush3.bf16.msra.mxu0 %v5625_v42  ;;  %3949 = vmatpush3.bf16.msra.mxu1 %v5630_v5 }
  0xc1   :  { %3928 = vmatprep.subr.bf16.mxu0 %v5637_v27  ;;  %3950 = vmatprep.subr.bf16.mxu1 %v5644_v23  ;;  %v5679_v23 = vld [vmem:[%s6423_s1 + $0x6b8] sm:$0xff]  }
  0xc2   :  { %6486 = vst [vmem:[#allocation25_spill] sm:$0xff] %v5679_v23  ;;  %v25_v27 = vld [vmem:[%s6422_s0 + $0x18] sm:$0x7] }
  0xc4   :  { %3929 = vmatpush3.bf16.msra.mxu0 %v5649_v29  ;;  %3951 = vmatpush3.bf16.msra.mxu1 %v5660_v41 }
  0xc5   :  { %8 = vsyncpa [#allocation4], 0  ;;  %3958 = vmatprep.subr.bf16.mxu0 %v5667_v34  ;;  %v6443_v25 = vmov 0.0   ;;  %v5689_v33 = vld [vmem:[%s6423_s1 + $0x670] sm:$0xff]   ;;  %v561_v41 = vrot.slane %v25_v27, %v4820_v26  ;;  %v565_v29 = vrot.slane %v25_v27, %v4826_v28  ;;  %v569_v5 = vrot.slane %v25_v27, %v4832_v30  ;;  %v5730_v21 = vld [vmem:[%s6423_s1 + $0x628] sm:$0xff]  }
  0xc6   :  { %4284 = vmatprep.subr.bf16.mxu1 %v6443_v25  ;;  %6487 = vst [vmem:[#allocation26_spill] sm:$0xff] %v5689_v33  ;;  %v5705_v25 = vld [vmem:[%s6423_s1 + $0x630] sm:$0xff]   ;;  %vm4723_vm0 = vmmov 0   ;;  %vm20_vm1 = vcmask 516096   ;;  %vm3462_vm2 = vcmask 0  }
  0xc7   :  { %2751 = vmatmul.mubr.bf16.vlgmr.msra.gmra.mxu0 %v1015_v39  ;;  %2791 = vmatmul.mubr.bf16.vlgmr.msra.gmra.mxu1 %v1017_v38  ;;  %v5694_v42 = vpack.c.bf16 %v561_v41, %v561_v41  ;;  %v5696_v24 = vpack.c.bf16 %v565_v29, %v565_v29  ;;  %v5698_v34 = vpack.c.bf16 %v569_v5, %v569_v5  ;;  %v5710_v39 = vld [vmem:[%s6423_s1 + $0x6b0] sm:$0xff]   ;;  %v6490_v29 = vmov 0.0   ;;  %v5717_v5 = vld [vmem:[%s6423_s1 + $0x668] sm:$0xff]  }
  0xc8   :  { %3959 = vmatpush3.bf16.msra.mxu0 %v5672_v17  ;;  %4285 = vmatpush3.bf16.msra.mxu1 %v5679_v23  ;;  %6491 = vst [vmem:[#allocation29_spill] sm:$0xff] %v5717_v5  ;;  %21 = vst.msk [vmem:[#allocation2] sm:$0x1] %vm20_vm1, %v6490_v29 }
  0xc9   :  { %6488 = vst [vmem:[#allocation27_spill] sm:$0xff] %v5694_v42  ;;  %6489 = vst [vmem:[#allocation28_spill] sm:$0xff] %v5698_v34  ;;  %3960 = vmatprep.subr.bf16.mxu0 %v5689_v33  ;;  %4286 = vmatprep.subr.bf16.mxu1 %v6490_v29  ;;  %v648_v41 = vunpack.c.l.bf16 %v5694_v42  ;;  %v649_v38 = vunpack.c.l.bf16 %v5696_v24  ;;  %v650_v23 = vunpack.c.l.bf16 %v5698_v34  ;;  %v5735_v34 = vld [vmem:[%s6423_s1 + $0x6a8] sm:$0xff]   ;;  %v5750_v42 = vld [vmem:[%s6423_s1 + $0x620] sm:$0xff]  }
  0xca   :  { %4300 = vmatprep.mubr.msk.bf16.mxu1 %vm4723_vm0, %v6490_v29  ;;  %6492 = vst [vmem:[#allocation30_spill] sm:$0xff] %v5735_v34 }
  0xcb   :  { %v825_v17 = vcombine.low %v648_v41, %v649_v38  ;;  %v839_v33 = vrot.slane %v650_v23, %v4909_v12  ;;  %v5742_v23 = vld [vmem:[%s6423_s1 + $0x660] sm:$0xff]  }
  0xcc   :  { %3961 = vmatpush3.bf16.msra.mxu0 %v5705_v25  ;;  %4287 = vmatpush3.bf16.msra.mxu1 %v5710_v39  ;;  %6493 = vst [vmem:[#allocation31_spill] sm:$0xff] %v5742_v23 }
  0xcd   :  { %3962 = vmatprep.subr.bf16.mxu0 %v5717_v5  ;;  %4288 = vmatprep.subr.bf16.mxu1 %v6490_v29  ;;  %v832_v41 = vrot.slane %v825_v17, %v4909_v12  ;;  %v5755_v5 = vld [vmem:[%s6423_s1 + $0x6a0] sm:$0xff]   ;;  %v5762_v17 = vld [vmem:[%s6423_s1 + $0x658] sm:$0xff]  }
  0xce   :  { %6494 = vst [vmem:[#allocation32_spill] sm:$0xff] %v5755_v5  ;;  %6495 = vst [vmem:[#allocation33_spill] sm:$0xff] %v5762_v17 }
  0xcf   :  { %v840_v38 = vcombine.low %v832_v41, %v839_v33 }
  0xd0   :  { %3963 = vmatpush3.bf16.msra.mxu0 %v5730_v21  ;;  %4289 = vmatpush3.bf16.msra.mxu1 %v5735_v34  ;;  %v5770_v34 = vld [vmem:[%s6423_s1 + $0x618] sm:$0xff]  }
  0xd1   :  { %3964 = vmatprep.subr.bf16.mxu0 %v5742_v23  ;;  %4290 = vmatprep.subr.bf16.mxu1 %v6490_v29  ;;  %v847_v33 = vrot.slane %v840_v38, %v4909_v12  ;;  %6496 = vst [vmem:[#allocation34_spill] sm:$0xff] %v5770_v34  ;;  %v5775_v23 = vld [vmem:[%s6423_s1 + $0x698] sm:$0xff]   ;;  %v5782_v12 = vld [vmem:[%s6423_s1 + $0x650] sm:$0xff]  }
  0xd2   :  { %6497 = vst [vmem:[#allocation35_spill] sm:$0xff] %v5775_v23  ;;  %6498 = vst [vmem:[#allocation36_spill] sm:$0xff] %v5782_v12 }
  0xd3   :  { %v855_v41 = vsub.f32 %v25_v27, %v847_v33  ;;  %v5790_v33 = vld [vmem:[%s6423_s1 + $0x610] sm:$0xff]  }
  0xd4   :  { %3965 = vmatpush3.bf16.msra.mxu0 %v5750_v42  ;;  %4291 = vmatpush3.bf16.msra.mxu1 %v5755_v5  ;;  %6499 = vst [vmem:[#allocation37_spill] sm:$0xff] %v5790_v33  ;;  %v4552_v5 = vld [vmem:[%s6423_s1 + $0x30] sm:$0xff]  }
  0xd5   :  { %3966 = vmatprep.subr.bf16.mxu0 %v5762_v17  ;;  %4292 = vmatprep.subr.bf16.mxu1 %v6490_v29  ;;  %v963_v27 = vrot.slane %v855_v41, %v4826_v28  ;;  %v5795_v17 = vld [vmem:[%s6423_s1 + $0x690] sm:$0xff]   ;;  %v5802_v28 = vld [vmem:[%s6423_s1 + $0x648] sm:$0xff]  }
  0xd6   :  { %6500 = vst [vmem:[#allocation38_spill] sm:$0xff] %v5795_v17  ;;  %6501 = vst [vmem:[#allocation39_spill] sm:$0xff] %v5802_v28 }
  0xd7   :  { %v1020_v38 = vpack.c.bf16 %v963_v27, %v963_v27  ;;  %v5809_v27 = vld [vmem:[%s6423_s1 + $0x608] sm:$0xff]  }
  0xd8   :  { %3967 = vmatpush3.bf16.msra.mxu0 %v5770_v34  ;;  %4293 = vmatpush3.bf16.msra.mxu1 %v5775_v23  ;;  %6502 = vst [vmem:[#allocation40_spill] sm:$0xff] %v5809_v27  ;;  %v5830_v23 = vld [vmem:[%s6423_s1 + $0x600] sm:$0xff]  }
  0xd9   :  { %3968 = vmatprep.subr.bf16.mxu0 %v5782_v12  ;;  %4294 = vmatprep.subr.bf16.mxu1 %v6490_v29  ;;  %v5814_v12 = vld [vmem:[%s6423_s1 + $0x688] sm:$0xff]   ;;  %6505 = vst [vmem:[#allocation43_spill] sm:$0xff] %v5830_v23 }
  0xda   :  { %2830 = vmatprep.mubr.bf16.mxu0 %v1020_v38  ;;  %6503 = vst [vmem:[#allocation41_spill] sm:$0xff] %v5814_v12  ;;  %v5821_v38 = vld [vmem:[%s6423_s1 + $0x640] sm:$0xff]  }
  0xdb   :  { %6504 = vst [vmem:[#allocation42_spill] sm:$0xff] %v5821_v38 }
  0xdc   :  { %3969 = vmatpush3.bf16.msra.mxu0 %v5790_v33  ;;  %4295 = vmatpush3.bf16.msra.mxu1 %v5795_v17  ;;  %v959_v17 = vrot.slane %v855_v41, %v4820_v26  ;;  %v967_v33 = vrot.slane %v855_v41, %v4832_v30  ;;  %v4546_v41 = vld [vmem:[%s6423_s1 + $0x78] sm:$0xff]  }
  0xdd   :  { %3970 = vmatprep.subr.bf16.mxu0 %v5802_v28  ;;  %4296 = vmatprep.subr.bf16.mxu1 %v6490_v29  ;;  %v5835_v28 = vld [vmem:[%s6423_s1 + $0x680] sm:$0xff]  }
  0xde   :  { %6506 = vst [vmem:[#allocation44_spill] sm:$0xff] %v5835_v28  ;;  %v1019_v26 = vpack.c.bf16 %v959_v17, %v959_v17  ;;  %v1021_v30 = vpack.c.bf16 %v967_v33, %v967_v33  ;;  %v4548_v17 = vld [vmem:[%s6423_s1 + $0x38] sm:$0xff]  }
  0xdf   :  { %v4549_v33 = vld [vmem:[%s6423_s1 + $0xb8] sm:$0xff]  }
  0xe0   :  { %3971 = vmatpush3.bf16.msra.mxu0 %v5809_v27  ;;  %4297 = vmatpush3.bf16.msra.mxu1 %v5814_v12  ;;  %v4547_v12 = vld [vmem:[%s6423_s1 + $0xf8] sm:$0xff]  }
  0xe1   :  { %3972 = vmatprep.subr.bf16.mxu0 %v5821_v38  ;;  %4298 = vmatprep.subr.bf16.mxu1 %v6490_v29 }
  0xe4   :  { %3973 = vmatpush3.bf16.msra.mxu0 %v5830_v23  ;;  %4299 = vmatpush3.bf16.msra.mxu1 %v5835_v28 }
  0xe5   :  { %3989 = vmatprep.subr.bf16.mxu0 %v4546_v41  ;;  %4011 = vmatprep.subr.bf16.mxu1 %v4547_v12  ;;  %v4550_v12 = vld [vmem:[%s6423_s1 + $0x70] sm:$0xff]  }
  0xe7   :  { %v3710_v27 = vpop.f32.mrf.mxu0  ;;  %v3732_v38 = vpop.f32.mrf.mxu1  ;;  %2831 = vmatmul.mubr.bf16.vlgmr.msra.gmra.mxu0 %v1019_v26  ;;  %4301 = vmatmul.mubr.bf16.vlgmr.msra.gmra.mxu1 %v1021_v30  ;;  %v4551_v26 = vld [vmem:[%s6423_s1 + $0xf0] sm:$0xff]  }
  0xe8   :  { %3990 = vmatpush3.bf16.msra.mxu0 %v4548_v17  ;;  %4012 = vmatpush3.bf16.msra.mxu1 %v4549_v33 }
  0xe9   :  { %v3711_v41 = vpop.f32.mrf.mxu0  ;;  %v3733_v28 = vpop.f32.mrf.mxu1  ;;  %3991 = vmatprep.subr.bf16.mxu0 %v4550_v12  ;;  %4013 = vmatprep.subr.bf16.mxu1 %v4551_v26  ;;  %v4553_v12 = vld [vmem:[%s6423_s1 + $0xb0] sm:$0xff]   ;;  %v4560_v26 = vld [vmem:[%s6423_s1 + $0x20] sm:$0xff]  }
  0xea   :  { %v3712_v30 = vadd.f32 %v3711_v41, %v3710_v27  ;;  %v3734_v23 = vadd.f32 %v3733_v28, %v3732_v38  ;;  %2910 = vmatprep.mubr.bf16.mxu0 %v4886_v54  ;;  %2950 = vmatprep.mubr.bf16.mxu1 %v4890_v56  ;;  %v4554_v54 = vld [vmem:[%s6423_s1 + $0x68] sm:$0xff]   ;;  %v4558_v38 = vld [vmem:[%s6423_s1 + $0x60] sm:$0xff]  }
  0xeb   :  { %v3713_v17 = vpop.f32.mrf.mxu0  ;;  %v3735_v33 = vpop.f32.mrf.mxu1  ;;  %v4555_v56 = vld [vmem:[%s6423_s1 + $0xe8] sm:$0xff]   ;;  %v4559_v41 = vld [vmem:[%s6423_s1 + $0xe0] sm:$0xff]  }
  0xec   :  { %v5861_v34 = vadd.f32 %v3734_v23, %v3712_v30  ;;  %3992 = vmatpush3.bf16.msra.mxu0 %v4552_v5  ;;  %4014 = vmatpush3.bf16.msra.mxu1 %v4553_v12  ;;  %v4556_v5 = vld [vmem:[%s6423_s1 + $0x28] sm:$0xff]   ;;  %v4561_v30 = vld [vmem:[%s6423_s1 + $0xa0] sm:$0xff]   ;;  %v4562_v17 = vld [vmem:[%s6423_s1 + $0x58] sm:$0xff]  }
  0xed   :  { %v3714_v27 = vpop.f32.mrf.mxu0  ;;  %v3736_v28 = vpop.f32.mrf.mxu1  ;;  %3993 = vmatprep.subr.bf16.mxu0 %v4554_v54  ;;  %4015 = vmatprep.subr.bf16.mxu1 %v4555_v56  ;;  %v4557_v23 = vld [vmem:[%s6423_s1 + $0xa8] sm:$0xff]   ;;  %v4563_v33 = vld [vmem:[%s6423_s1 + $0xd8] sm:$0xff]   ;;  %v4567_v54 = vld [vmem:[%s6423_s1 + $0xd0] sm:$0xff]  }
  0xee   :  { %v4564_v12 = vld [vmem:[%s6423_s1 + $0x18] sm:$0xff]   ;;  %v4566_v28 = vld [vmem:[%s6423_s1 + $0x50] sm:$0xff]  }
  0xef   :  { %v4565_v27 = vld [vmem:[%s6423_s1 + $0x98] sm:$0xff]   ;;  %v4568_v56 = vld [vmem:[%s6423_s1 + $0x10] sm:$0xff]  }
  0xf0   :  { %3994 = vmatpush3.bf16.msra.mxu0 %v4556_v5  ;;  %4016 = vmatpush3.bf16.msra.mxu1 %v4557_v23  ;;  %v4569_v5 = vld [vmem:[%s6423_s1 + $0x90] sm:$0xff]   ;;  %v4570_v23 = vld [vmem:[%s6423_s1 + $0x48] sm:$0xff]  }
  0xf1   :  { %3995 = vmatprep.subr.bf16.mxu0 %v4558_v38  ;;  %4017 = vmatprep.subr.bf16.mxu1 %v4559_v41  ;;  %v4571_v38 = vld [vmem:[%s6423_s1 + $0xc8] sm:$0xff]  }
  0xf2   :  { %v4572_v41 = vld [vmem:[%s6423_s1 + $0x8] sm:$0xff]  }
  0xf4   :  { %3996 = vmatpush3.bf16.msra.mxu0 %v4560_v26  ;;  %4018 = vmatpush3.bf16.msra.mxu1 %v4561_v30  ;;  %v4573_v26 = vld [vmem:[%s6423_s1 + $0x88] sm:$0xff]   ;;  %v4574_v30 = vld [vmem:[%s6423_s1 + $0x40] sm:$0xff]  }
  0xf5   :  { %3997 = vmatprep.subr.bf16.mxu0 %v4562_v17  ;;  %4019 = vmatprep.subr.bf16.mxu1 %v4563_v33  ;;  %v4575_v17 = vld [vmem:[%s6423_s1 + $0xc0] sm:$0xff]  }
  0xf6   :  { %v4576_v33 = vld [vmem:[%s6423_s1] sm:$0xff]  }
  0xf8   :  { %3998 = vmatpush3.bf16.msra.mxu0 %v4564_v12  ;;  %4020 = vmatpush3.bf16.msra.mxu1 %v4565_v27  ;;  %v4577_v12 = vld [vmem:[%s6423_s1 + $0x80] sm:$0xff]   ;;  %v4578_v27 = vld [vmem:[%s6423_s1 + $0x178] sm:$0xff]  }
  0xf9   :  { %3999 = vmatprep.subr.bf16.mxu0 %v4566_v28  ;;  %4021 = vmatprep.subr.bf16.mxu1 %v4567_v54  ;;  %v4579_v28 = vld [vmem:[%s6423_s1 + $0x1f8] sm:$0xff]  }
  0xfc   :  { %4000 = vmatpush3.bf16.msra.mxu0 %v4568_v56  ;;  %4022 = vmatpush3.bf16.msra.mxu1 %v4569_v5  ;;  %v4580_v5 = vld [vmem:[%s6423_s1 + $0x138] sm:$0xff]  }
  0xfd   :  { %4001 = vmatprep.subr.bf16.mxu0 %v4570_v23  ;;  %4023 = vmatprep.subr.bf16.mxu1 %v4571_v38  ;;  %v4581_v23 = vld [vmem:[%s6423_s1 + $0x1b8] sm:$0xff]  }
 0x100   :  { %4002 = vmatpush3.bf16.msra.mxu0 %v4572_v41  ;;  %4024 = vmatpush3.bf16.msra.mxu1 %v4573_v26  ;;  %v4582_v26 = vld [vmem:[%s6423_s1 + $0x170] sm:$0xff]  }
 0x101   :  { %4003 = vmatprep.subr.bf16.mxu0 %v4574_v30  ;;  %4025 = vmatprep.subr.bf16.mxu1 %v4575_v17 }
 0x104   :  { %4004 = vmatpush3.bf16.msra.mxu0 %v4576_v33  ;;  %4026 = vmatpush3.bf16.msra.mxu1 %v4577_v12 }
 0x105   :  { %4033 = vmatprep.subr.bf16.mxu0 %v4578_v27  ;;  %4055 = vmatprep.subr.bf16.mxu1 %v4579_v28  ;;  %v4584_v27 = vld [vmem:[%s6423_s1 + $0x130] sm:$0xff]  }
 0x106   :  { %v4585_v28 = vld [vmem:[%s6423_s1 + $0x1b0] sm:$0xff]  }
 0x107   :  { %v3754_v54 = vpop.f32.mrf.mxu0  ;;  %2911 = vmatmul.mubr.bf16.vlgmr.msra.gmra.mxu0 %v4884_v53  ;;  %v3776_v56 = vpop.f32.mrf.mxu1  ;;  %2951 = vmatmul.mubr.bf16.vlgmr.msra.gmra.mxu1 %v4888_v55  ;;  %v4583_v53 = vld [vmem:[%s6423_s1 + $0x1f0] sm:$0xff]  }
 0x108   :  { %4034 = vmatpush3.bf16.msra.mxu0 %v4580_v5  ;;  %4056 = vmatpush3.bf16.msra.mxu1 %v4581_v23  ;;  %v4588_v5 = vld [vmem:[%s6423_s1 + $0x128] sm:$0xff]  }
 0x109   :  { %v3755_v38 = vpop.f32.mrf.mxu0  ;;  %v3777_v41 = vpop.f32.mrf.mxu1  ;;  %4035 = vmatprep.subr.bf16.mxu0 %v4582_v26  ;;  %4057 = vmatprep.subr.bf16.mxu1 %v4583_v53  ;;  %v4589_v23 = vld [vmem:[%s6423_s1 + $0x1a8] sm:$0xff]   ;;  %v4592_v26 = vld [vmem:[%s6423_s1 + $0x120] sm:$0xff]  }
 0x10a   :  { %v3756_v55 = vadd.f32 %v3755_v38, %v3754_v54  ;;  %v3778_v30 = vadd.f32 %v3777_v41, %v3776_v56  ;;  %2990 = vmatprep.mubr.bf16.mxu0 %v4894_v58  ;;  %3030 = vmatprep.mubr.bf16.mxu1 %v4898_v60  ;;  %v4586_v58 = vld [vmem:[%s6423_s1 + $0x168] sm:$0xff]   ;;  %v4590_v38 = vld [vmem:[%s6423_s1 + $0x160] sm:$0xff]  }
 0x10b   :  { %v3757_v17 = vpop.f32.mrf.mxu0  ;;  %v3779_v33 = vpop.f32.mrf.mxu1  ;;  %v4587_v60 = vld [vmem:[%s6423_s1 + $0x1e8] sm:$0xff]   ;;  %v4591_v41 = vld [vmem:[%s6423_s1 + $0x1e0] sm:$0xff]  }
 0x10c   :  { %v2433_v12 = vadd.f32 %v3756_v55, %v5861_v34  ;;  %4036 = vmatpush3.bf16.msra.mxu0 %v4584_v27  ;;  %4058 = vmatpush3.bf16.msra.mxu1 %v4585_v28  ;;  %v4593_v53 = vld [vmem:[%s6423_s1 + $0x1a0] sm:$0xff]   ;;  %v4594_v55 = vld [vmem:[%s6423_s1 + $0x158] sm:$0xff]   ;;  %v4599_v27 = vld [vmem:[%s6423_s1 + $0x1d0] sm:$0xff]  }
 0x10d   :  { %v3758_v54 = vpop.f32.mrf.mxu0  ;;  %v3780_v56 = vpop.f32.mrf.mxu1  ;;  %4037 = vmatprep.subr.bf16.mxu0 %v4586_v58  ;;  %4059 = vmatprep.subr.bf16.mxu1 %v4587_v60  ;;  %v4596_v17 = vld [vmem:[%s6423_s1 + $0x118] sm:$0xff]   ;;  %v4600_v28 = vld [vmem:[%s6423_s1 + $0x110] sm:$0xff]   ;;  %v4603_v58 = vld [vmem:[%s6423_s1 + $0x1c8] sm:$0xff]  }
 0x10e   :  { %v5976_v34 = vadd.f32 %v3778_v30, %v2433_v12  ;;  %v4595_v30 = vld [vmem:[%s6423_s1 + $0x1d8] sm:$0xff]   ;;  %v4598_v12 = vld [vmem:[%s6423_s1 + $0x150] sm:$0xff]   ;;  %v4602_v56 = vld [vmem:[%s6423_s1 + $0x148] sm:$0xff]  }
 0x10f   :  { %v4597_v33 = vld [vmem:[%s6423_s1 + $0x198] sm:$0xff]   ;;  %v4601_v54 = vld [vmem:[%s6423_s1 + $0x190] sm:$0xff]   ;;  %v4604_v60 = vld [vmem:[%s6423_s1 + $0x108] sm:$0xff]  }
 0x110   :  { %4038 = vmatpush3.bf16.msra.mxu0 %v4588_v5  ;;  %4060 = vmatpush3.bf16.msra.mxu1 %v4589_v23  ;;  %v4605_v5 = vld [vmem:[%s6423_s1 + $0x188] sm:$0xff]   ;;  %v4606_v23 = vld [vmem:[%s6423_s1 + $0x140] sm:$0xff]  }
 0x111   :  { %4039 = vmatprep.subr.bf16.mxu0 %v4590_v38  ;;  %4061 = vmatprep.subr.bf16.mxu1 %v4591_v41  ;;  %v4607_v38 = vld [vmem:[%s6423_s1 + $0x1c0] sm:$0xff]  }
 0x112   :  { %v4608_v41 = vld [vmem:[%s6423_s1 + $0x100] sm:$0xff]  }
 0x114   :  { %4040 = vmatpush3.bf16.msra.mxu0 %v4592_v26  ;;  %4062 = vmatpush3.bf16.msra.mxu1 %v4593_v53  ;;  %v4609_v26 = vld [vmem:[%s6423_s1 + $0x180] sm:$0xff]   ;;  %v4610_v53 = vld [vmem:[%s6423_s1 + $0x278] sm:$0xff]  }
 0x115   :  { %4041 = vmatprep.subr.bf16.mxu0 %v4594_v55  ;;  %4063 = vmatprep.subr.bf16.mxu1 %v4595_v30  ;;  %v4611_v55 = vld [vmem:[%s6423_s1 + $0x2f8] sm:$0xff]  }
 0x118   :  { %4042 = vmatpush3.bf16.msra.mxu0 %v4596_v17  ;;  %4064 = vmatpush3.bf16.msra.mxu1 %v4597_v33  ;;  %v4612_v33 = vld [vmem:[%s6423_s1 + $0x238] sm:$0xff]  }
 0x119   :  { %4043 = vmatprep.subr.bf16.mxu0 %v4598_v12  ;;  %4065 = vmatprep.subr.bf16.mxu1 %v4599_v27  ;;  %v4613_v12 = vld [vmem:[%s6423_s1 + $0x2b8] sm:$0xff]  }
 0x11c   :  { %4044 = vmatpush3.bf16.msra.mxu0 %v4600_v28  ;;  %4066 = vmatpush3.bf16.msra.mxu1 %v4601_v54  ;;  %v4614_v54 = vld [vmem:[%s6423_s1 + $0x270] sm:$0xff]  }
 0x11d   :  { %4045 = vmatprep.subr.bf16.mxu0 %v4602_v56  ;;  %4067 = vmatprep.subr.bf16.mxu1 %v4603_v58 }
 0x120   :  { %4046 = vmatpush3.bf16.msra.mxu0 %v4604_v60  ;;  %4068 = vmatpush3.bf16.msra.mxu1 %v4605_v5 }
 0x121   :  { %4047 = vmatprep.subr.bf16.mxu0 %v4606_v23  ;;  %4069 = vmatprep.subr.bf16.mxu1 %v4607_v38  ;;  %v4616_v23 = vld [vmem:[%s6423_s1 + $0x230] sm:$0xff]  }
 0x122   :  { %v4617_v38 = vld [vmem:[%s6423_s1 + $0x2b0] sm:$0xff]  }
 0x124   :  { %4048 = vmatpush3.bf16.msra.mxu0 %v4608_v41  ;;  %4070 = vmatpush3.bf16.msra.mxu1 %v4609_v26 }
 0x125   :  { %4077 = vmatprep.subr.bf16.mxu0 %v4610_v53  ;;  %4099 = vmatprep.subr.bf16.mxu1 %v4611_v55  ;;  %v4620_v53 = vld [vmem:[%s6423_s1 + $0x228] sm:$0xff]  }
 0x126   :  { %v4621_v55 = vld [vmem:[%s6423_s1 + $0x2a8] sm:$0xff]  }
 0x127   :  { %v3798_v30 = vpop.f32.mrf.mxu0  ;;  %2991 = vmatmul.mubr.bf16.vlgmr.msra.gmra.mxu0 %v4892_v57  ;;  %v3820_v17 = vpop.f32.mrf.mxu1  ;;  %3031 = vmatmul.mubr.bf16.vlgmr.msra.gmra.mxu1 %v4896_v59  ;;  %v4615_v57 = vld [vmem:[%s6423_s1 + $0x2f0] sm:$0xff]  }
 0x128   :  { %4078 = vmatpush3.bf16.msra.mxu0 %v4612_v33  ;;  %4100 = vmatpush3.bf16.msra.mxu1 %v4613_v12  ;;  %v4624_v33 = vld [vmem:[%s6423_s1 + $0x220] sm:$0xff]  }
 0x129   :  { %v3799_v27 = vpop.f32.mrf.mxu0  ;;  %v3821_v28 = vpop.f32.mrf.mxu1  ;;  %4079 = vmatprep.subr.bf16.mxu0 %v4614_v54  ;;  %4101 = vmatprep.subr.bf16.mxu1 %v4615_v57  ;;  %v4625_v12 = vld [vmem:[%s6423_s1 + $0x2a0] sm:$0xff]   ;;  %v4628_v54 = vld [vmem:[%s6423_s1 + $0x218] sm:$0xff]  }
 0x12a   :  { %v3800_v59 = vadd.f32 %v3799_v27, %v3798_v30  ;;  %v3822_v56 = vadd.f32 %v3821_v28, %v3820_v17  ;;  %3070 = vmatprep.mubr.bf16.mxu0 %v5093_v63  ;;  %3110 = vmatprep.mubr.bf16.mxu1 %v5100_v2  ;;  %v4618_v63 = vld [vmem:[%s6423_s1 + $0x268] sm:$0xff]   ;;  %v4622_v30 = vld [vmem:[%s6423_s1 + $0x260] sm:$0xff]   ;;  %v4626_v27 = vld [vmem:[%s6423_s1 + $0x258] sm:$0xff]  }
 0x12b   :  { %v3801_v58 = vpop.f32.mrf.mxu0  ;;  %v3823_v60 = vpop.f32.mrf.mxu1  ;;  %v4619_v2 = vld [vmem:[%s6423_s1 + $0x2e8] sm:$0xff]   ;;  %v4623_v17 = vld [vmem:[%s6423_s1 + $0x2e0] sm:$0xff]   ;;  %v4627_v28 = vld [vmem:[%s6423_s1 + $0x2d8] sm:$0xff]  }
 0x12c   :  { %v2513_v5 = vadd.f32 %v3800_v59, %v5976_v34  ;;  %4080 = vmatpush3.bf16.msra.mxu0 %v4616_v23  ;;  %4102 = vmatpush3.bf16.msra.mxu1 %v4617_v38  ;;  %v4629_v57 = vld [vmem:[%s6423_s1 + $0x298] sm:$0xff]   ;;  %v4630_v59 = vld [vmem:[%s6423_s1 + $0x250] sm:$0xff]   ;;  %v4635_v23 = vld [vmem:[%s6423_s1 + $0x2c8] sm:$0xff]  }
 0x12d   :  { %v3802_v41 = vpop.f32.mrf.mxu0  ;;  %v3824_v26 = vpop.f32.mrf.mxu1  ;;  %4081 = vmatprep.subr.bf16.mxu0 %v4618_v63  ;;  %4103 = vmatprep.subr.bf16.mxu1 %v4619_v2  ;;  %v4632_v58 = vld [vmem:[%s6423_s1 + $0x210] sm:$0xff]   ;;  %v4636_v38 = vld [vmem:[%s6423_s1 + $0x208] sm:$0xff]   ;;  %v4639_v63 = vld [vmem:[%s6423_s1 + $0x2c0] sm:$0xff]  }
 0x12e   :  { %v6079_v34 = vadd.f32 %v3822_v56, %v2513_v5  ;;  %v4631_v56 = vld [vmem:[%s6423_s1 + $0x2d0] sm:$0xff]   ;;  %v4634_v5 = vld [vmem:[%s6423_s1 + $0x248] sm:$0xff]   ;;  %v4638_v26 = vld [vmem:[%s6423_s1 + $0x240] sm:$0xff]  }
 0x12f   :  { %v4633_v60 = vld [vmem:[%s6423_s1 + $0x290] sm:$0xff]   ;;  %v4637_v41 = vld [vmem:[%s6423_s1 + $0x288] sm:$0xff]   ;;  %v4640_v2 = vld [vmem:[%s6423_s1 + $0x200] sm:$0xff]  }
 0x130   :  { %4082 = vmatpush3.bf16.msra.mxu0 %v4620_v53  ;;  %4104 = vmatpush3.bf16.msra.mxu1 %v4621_v55  ;;  %v4641_v53 = vld [vmem:[%s6423_s1 + $0x280] sm:$0xff]   ;;  %v4642_v55 = vld [vmem:[%s6423_s1 + $0x378] sm:$0xff]  }
 0x131   :  { %4083 = vmatprep.subr.bf16.mxu0 %v4622_v30  ;;  %4105 = vmatprep.subr.bf16.mxu1 %v4623_v17  ;;  %v4643_v30 = vld [vmem:[%s6423_s1 + $0x3f8] sm:$0xff]  }
 0x134   :  { %4084 = vmatpush3.bf16.msra.mxu0 %v4624_v33  ;;  %4106 = vmatpush3.bf16.msra.mxu1 %v4625_v12  ;;  %v4644_v12 = vld [vmem:[%s6423_s1 + $0x338] sm:$0xff]  }
 0x135   :  { %4085 = vmatprep.subr.bf16.mxu0 %v4626_v27  ;;  %4107 = vmatprep.subr.bf16.mxu1 %v4627_v28  ;;  %v4645_v27 = vld [vmem:[%s6423_s1 + $0x3b8] sm:$0xff]  }
 0x138   :  { %4086 = vmatpush3.bf16.msra.mxu0 %v4628_v54  ;;  %4108 = vmatpush3.bf16.msra.mxu1 %v4629_v57  ;;  %v4646_v57 = vld [vmem:[%s6423_s1 + $0x370] sm:$0xff]  }
 0x139   :  { %4087 = vmatprep.subr.bf16.mxu0 %v4630_v59  ;;  %4109 = vmatprep.subr.bf16.mxu1 %v4631_v56 }
 0x13c   :  { %4088 = vmatpush3.bf16.msra.mxu0 %v4632_v58  ;;  %4110 = vmatpush3.bf16.msra.mxu1 %v4633_v60 }
 0x13d   :  { %4089 = vmatprep.subr.bf16.mxu0 %v4634_v5  ;;  %4111 = vmatprep.subr.bf16.mxu1 %v4635_v23  ;;  %v4648_v5 = vld [vmem:[%s6423_s1 + $0x330] sm:$0xff]  }
 0x13e   :  { %v4649_v23 = vld [vmem:[%s6423_s1 + $0x3b0] sm:$0xff]  }
 0x140   :  { %4090 = vmatpush3.bf16.msra.mxu0 %v4636_v38  ;;  %4112 = vmatpush3.bf16.msra.mxu1 %v4637_v41 }
 0x141   :  { %4091 = vmatprep.subr.bf16.mxu0 %v4638_v26  ;;  %4113 = vmatprep.subr.bf16.mxu1 %v4639_v63  ;;  %v4652_v26 = vld [vmem:[%s6423_s1 + $0x328] sm:$0xff]  }
 0x142   :  { %v4653_v63 = vld [vmem:[%s6423_s1 + $0x3a8] sm:$0xff]  }
 0x144   :  { %4092 = vmatpush3.bf16.msra.mxu0 %v4640_v2  ;;  %4114 = vmatpush3.bf16.msra.mxu1 %v4641_v53  ;;  %v4654_v2 = vld [vmem:[%s6423_s1 + $0x360] sm:$0xff]  }
 0x145   :  { %4121 = vmatprep.subr.bf16.mxu0 %v4642_v55  ;;  %4143 = vmatprep.subr.bf16.mxu1 %v4643_v30  ;;  %v4655_v53 = vld [vmem:[%s6423_s1 + $0x3e0] sm:$0xff]  }
 0x146   :  { %v4656_v55 = vld [vmem:[%s6423_s1 + $0x320] sm:$0xff]  }
 0x147   :  { %v3842_v17 = vpop.f32.mrf.mxu0  ;;  %3071 = vmatmul.mubr.bf16.vlgmr.msra.gmra.mxu0 %v5091_v62  ;;  %v3864_v33 = vpop.f32.mrf.mxu1  ;;  %3111 = vmatmul.mubr.bf16.vlgmr.msra.gmra.mxu1 %v5098_v1  ;;  %v4647_v62 = vld [vmem:[%s6423_s1 + $0x3f0] sm:$0xff]   ;;  %v4657_v30 = vld [vmem:[%s6423_s1 + $0x3a0] sm:$0xff]  }
 0x148   :  { %4122 = vmatpush3.bf16.msra.mxu0 %v4644_v12  ;;  %4144 = vmatpush3.bf16.msra.mxu1 %v4645_v27  ;;  %v4660_v12 = vld [vmem:[%s6423_s1 + $0x318] sm:$0xff]  }
 0x149   :  { %v3843_v28 = vpop.f32.mrf.mxu0  ;;  %v3865_v54 = vpop.f32.mrf.mxu1  ;;  %4123 = vmatprep.subr.bf16.mxu0 %v4646_v57  ;;  %4145 = vmatprep.subr.bf16.mxu1 %v4647_v62  ;;  %v4661_v27 = vld [vmem:[%s6423_s1 + $0x398] sm:$0xff]   ;;  %v4664_v57 = vld [vmem:[%s6423_s1 + $0x310] sm:$0xff]  }
 0x14a   :  { %v3844_v1 = vadd.f32 %v3843_v28, %v3842_v17  ;;  %v3866_v59 = vadd.f32 %v3865_v54, %v3864_v33  ;;  %3150 = vmatprep.mubr.bf16.mxu0 %v5104_v4  ;;  %3190 = vmatprep.mubr.bf16.mxu1 %v5111_v7  ;;  %v4650_v4 = vld [vmem:[%s6423_s1 + $0x368] sm:$0xff]   ;;  %v4658_v17 = vld [vmem:[%s6423_s1 + $0x358] sm:$0xff]   ;;  %v4662_v28 = vld [vmem:[%s6423_s1 + $0x350] sm:$0xff]  }
 0x14b   :  { %v3845_v56 = vpop.f32.mrf.mxu0  ;;  %v3867_v58 = vpop.f32.mrf.mxu1  ;;  %v4651_v7 = vld [vmem:[%s6423_s1 + $0x3e8] sm:$0xff]   ;;  %v4659_v33 = vld [vmem:[%s6423_s1 + $0x3d8] sm:$0xff]   ;;  %v4663_v54 = vld [vmem:[%s6423_s1 + $0x3d0] sm:$0xff]  }
 0x14c   :  { %v2593_v60 = vadd.f32 %v3844_v1, %v6079_v34  ;;  %4124 = vmatpush3.bf16.msra.mxu0 %v4648_v5  ;;  %4146 = vmatpush3.bf16.msra.mxu1 %v4649_v23  ;;  %v4665_v62 = vld [vmem:[%s6423_s1 + $0x390] sm:$0xff]   ;;  %v4666_v1 = vld [vmem:[%s6423_s1 + $0x348] sm:$0xff]   ;;  %v4671_v5 = vld [vmem:[%s6423_s1 + $0x3c0] sm:$0xff]  }
 0x14d   :  { %v3846_v38 = vpop.f32.mrf.mxu0  ;;  %v3868_v41 = vpop.f32.mrf.mxu1  ;;  %4125 = vmatprep.subr.bf16.mxu0 %v4650_v4  ;;  %4147 = vmatprep.subr.bf16.mxu1 %v4651_v7  ;;  %v4668_v56 = vld [vmem:[%s6423_s1 + $0x308] sm:$0xff]   ;;  %v4672_v23 = vld [vmem:[%s6423_s1 + $0x300] sm:$0xff]   ;;  %v4675_v4 = vld [vmem:[%s6423_s1 + $0x4f8] sm:$0xff]  }
 0x14e   :  { %v6182_v34 = vadd.f32 %v3866_v59, %v2593_v60  ;;  %v4667_v59 = vld [vmem:[%s6423_s1 + $0x3c8] sm:$0xff]   ;;  %v4670_v60 = vld [vmem:[%s6423_s1 + $0x340] sm:$0xff]   ;;  %v4674_v41 = vld [vmem:[%s6423_s1 + $0x478] sm:$0xff]  }
 0x14f   :  { %v4669_v58 = vld [vmem:[%s6423_s1 + $0x388] sm:$0xff]   ;;  %v4673_v38 = vld [vmem:[%s6423_s1 + $0x380] sm:$0xff]  }
 0x150   :  { %4126 = vmatpush3.bf16.msra.mxu0 %v4652_v26  ;;  %4148 = vmatpush3.bf16.msra.mxu1 %v4653_v63  ;;  %v4676_v63 = vld [vmem:[%s6423_s1 + $0x438] sm:$0xff]  }
 0x151   :  { %4127 = vmatprep.subr.bf16.mxu0 %v4654_v2  ;;  %4149 = vmatprep.subr.bf16.mxu1 %v4655_v53  ;;  %v4677_v2 = vld [vmem:[%s6423_s1 + $0x4b8] sm:$0xff]  }
 0x154   :  { %4128 = vmatpush3.bf16.msra.mxu0 %v4656_v55  ;;  %4150 = vmatpush3.bf16.msra.mxu1 %v4657_v30  ;;  %v4678_v30 = vld [vmem:[%s6423_s1 + $0x470] sm:$0xff]  }
 0x155   :  { %4129 = vmatprep.subr.bf16.mxu0 %v4658_v17  ;;  %4151 = vmatprep.subr.bf16.mxu1 %v4659_v33 }
 0x158   :  { %4130 = vmatpush3.bf16.msra.mxu0 %v4660_v12  ;;  %4152 = vmatpush3.bf16.msra.mxu1 %v4661_v27 }
 0x159   :  { %4131 = vmatprep.subr.bf16.mxu0 %v4662_v28  ;;  %4153 = vmatprep.subr.bf16.mxu1 %v4663_v54  ;;  %v4680_v28 = vld [vmem:[%s6423_s1 + $0x430] sm:$0xff]  }
 0x15a   :  { %v4681_v54 = vld [vmem:[%s6423_s1 + $0x4b0] sm:$0xff]  }
 0x15c   :  { %4132 = vmatpush3.bf16.msra.mxu0 %v4664_v57  ;;  %4154 = vmatpush3.bf16.msra.mxu1 %v4665_v62 }
 0x15d   :  { %4133 = vmatprep.subr.bf16.mxu0 %v4666_v1  ;;  %4155 = vmatprep.subr.bf16.mxu1 %v4667_v59  ;;  %v4684_v1 = vld [vmem:[%s6423_s1 + $0x428] sm:$0xff]  }
 0x15e   :  { %v4685_v59 = vld [vmem:[%s6423_s1 + $0x4a8] sm:$0xff]  }
 0x160   :  { %4134 = vmatpush3.bf16.msra.mxu0 %v4668_v56  ;;  %4156 = vmatpush3.bf16.msra.mxu1 %v4669_v58  ;;  %v4686_v56 = vld [vmem:[%s6423_s1 + $0x460] sm:$0xff]  }
 0x161   :  { %4135 = vmatprep.subr.bf16.mxu0 %v4670_v60  ;;  %4157 = vmatprep.subr.bf16.mxu1 %v4671_v5  ;;  %v4687_v58 = vld [vmem:[%s6423_s1 + $0x4e0] sm:$0xff]  }
 0x162   :  { %v4688_v60 = vld [vmem:[%s6423_s1 + $0x420] sm:$0xff]  }
 0x163   :  { %v4689_v5 = vld [vmem:[%s6423_s1 + $0x4a0] sm:$0xff]  }
 0x164   :  { %4136 = vmatpush3.bf16.msra.mxu0 %v4672_v23  ;;  %4158 = vmatpush3.bf16.msra.mxu1 %v4673_v38  ;;  %v4690_v23 = vld [vmem:[%s6423_s1 + $0x458] sm:$0xff]  }
 0x165   :  { %4165 = vmatprep.subr.bf16.mxu0 %v4674_v41  ;;  %4187 = vmatprep.subr.bf16.mxu1 %v4675_v4  ;;  %v4691_v38 = vld [vmem:[%s6423_s1 + $0x4d8] sm:$0xff]  }
 0x166   :  { %v4692_v41 = vld [vmem:[%s6423_s1 + $0x418] sm:$0xff]  }
 0x167   :  { %v3886_v7 = vpop.f32.mrf.mxu0  ;;  %3151 = vmatmul.mubr.bf16.vlgmr.msra.gmra.mxu0 %v5102_v3  ;;  %v3908_v26 = vpop.f32.mrf.mxu1  ;;  %3191 = vmatmul.mubr.bf16.vlgmr.msra.gmra.mxu1 %v5109_v6  ;;  %v4679_v3 = vld [vmem:[%s6423_s1 + $0x4f0] sm:$0xff]   ;;  %v4693_v4 = vld [vmem:[%s6423_s1 + $0x498] sm:$0xff]  }
 0x168   :  { %4166 = vmatpush3.bf16.msra.mxu0 %v4676_v63  ;;  %4188 = vmatpush3.bf16.msra.mxu1 %v4677_v2  ;;  %v4696_v63 = vld [vmem:[%s6423_s1 + $0x410] sm:$0xff]  }
 0x169   :  { %v3887_v53 = vpop.f32.mrf.mxu0  ;;  %v3909_v55 = vpop.f32.mrf.mxu1  ;;  %4167 = vmatprep.subr.bf16.mxu0 %v4678_v30  ;;  %4189 = vmatprep.subr.bf16.mxu1 %v4679_v3  ;;  %v4697_v2 = vld [vmem:[%s6423_s1 + $0x490] sm:$0xff]   ;;  %v6523_v30 = vld [vmem:[#allocation6_spill] sm:$0xff] }
 0x16a   :  { %v3888_v6 = vadd.f32 %v3887_v53, %v3886_v7  ;;  %v3910_v17 = vadd.f32 %v3909_v55, %v3908_v26  ;;  %3230 = vmatprep.mubr.bf16.mxu0 %v5355_v50  ;;  %3270 = vmatprep.mubr.bf16.mxu1 %v5362_v0  ;;  %v4682_v50 = vld [vmem:[%s6423_s1 + $0x468] sm:$0xff]   ;;  %v4694_v7 = vld [vmem:[%s6423_s1 + $0x450] sm:$0xff]  }
 0x16b   :  { %v3889_v33 = vpop.f32.mrf.mxu0  ;;  %v3911_v12 = vpop.f32.mrf.mxu1  ;;  %v4683_v0 = vld [vmem:[%s6423_s1 + $0x4e8] sm:$0xff]   ;;  %v4695_v26 = vld [vmem:[%s6423_s1 + $0x4d0] sm:$0xff]  }
 0x16c   :  { %v2673_v27 = vadd.f32 %v3888_v6, %v6182_v34  ;;  %4168 = vmatpush3.bf16.msra.mxu0 %v4680_v28  ;;  %4190 = vmatpush3.bf16.msra.mxu1 %v4681_v54  ;;  %v4698_v53 = vld [vmem:[%s6423_s1 + $0x448] sm:$0xff]   ;;  %v6526_v33 = vld [vmem:[#allocation25_spill] sm:$0xff] }
 0x16d   :  { %v3890_v57 = vpop.f32.mrf.mxu0  ;;  %v3912_v62 = vpop.f32.mrf.mxu1  ;;  %4169 = vmatprep.subr.bf16.mxu0 %v4682_v50  ;;  %4191 = vmatprep.subr.bf16.mxu1 %v4683_v0  ;;  %v6524_v6 = vld [vmem:[#allocation7_spill] sm:$0xff]  ;;  %v6527_v28 = vld [vmem:[#allocation26_spill] sm:$0xff] }
 0x16e   :  { %v2713_v34 = vadd.f32 %v3910_v17, %v2673_v27  ;;  %v6525_v17 = vld [vmem:[#allocation24_spill] sm:$0xff] }
 0x170   :  { %4170 = vmatpush3.bf16.msra.mxu0 %v4684_v1  ;;  %4192 = vmatpush3.bf16.msra.mxu1 %v4685_v59  ;;  %v6528_v1 = vld [vmem:[#allocation29_spill] sm:$0xff] }
 0x171   :  { %4171 = vmatprep.subr.bf16.mxu0 %v4686_v56  ;;  %4193 = vmatprep.subr.bf16.mxu1 %v4687_v58  ;;  %v6530_v56 = vld [vmem:[#allocation31_spill] sm:$0xff]  ;;  %v6533_v58 = vld [vmem:[#allocation34_spill] sm:$0xff] }
 0x174   :  { %4172 = vmatpush3.bf16.msra.mxu0 %v4688_v60  ;;  %4194 = vmatpush3.bf16.msra.mxu1 %v4689_v5  ;;  %v6534_v60 = vld [vmem:[#allocation35_spill] sm:$0xff]  ;;  %v6535_v5 = vld [vmem:[#allocation36_spill] sm:$0xff] }
 0x175   :  { %4173 = vmatprep.subr.bf16.mxu0 %v4690_v23  ;;  %4195 = vmatprep.subr.bf16.mxu1 %v4691_v38  ;;  %v6537_v23 = vld [vmem:[#allocation38_spill] sm:$0xff]  ;;  %v6538_v38 = vld [vmem:[#allocation39_spill] sm:$0xff] }
 0x178   :  { %4174 = vmatpush3.bf16.msra.mxu0 %v4692_v41  ;;  %4196 = vmatpush3.bf16.msra.mxu1 %v4693_v4  ;;  %v6540_v41 = vld [vmem:[#allocation41_spill] sm:$0xff]  ;;  %v6541_v4 = vld [vmem:[#allocation42_spill] sm:$0xff] }
 0x179   :  { %4175 = vmatprep.subr.bf16.mxu0 %v4694_v7  ;;  %4197 = vmatprep.subr.bf16.mxu1 %v4695_v26  ;;  %v6542_v7 = vld [vmem:[#allocation43_spill] sm:$0xff]  ;;  %v6543_v26 = vld [vmem:[#allocation44_spill] sm:$0xff] }
 0x17c   :  { %4176 = vmatpush3.bf16.msra.mxu0 %v4696_v63  ;;  %4198 = vmatpush3.bf16.msra.mxu1 %v4697_v2  ;;  %v6544_v2 = vld [vmem:[#allocation27_spill] sm:$0xff] }
 0x17d   :  { %4177 = vmatprep.subr.bf16.mxu0 %v4698_v53  ;;  %4199 = vmatprep.subr.bf16.mxu1 %v5414_v47  ;;  %v6545_v53 = vld [vmem:[#allocation28_spill] sm:$0xff] }
 0x180   :  { %4178 = vmatpush3.bf16.msra.mxu0 %v5420_v51  ;;  %4200 = vmatpush3.bf16.msra.mxu1 %v5426_v11 }
 0x181   :  { %4179 = vmatprep.subr.bf16.mxu0 %v5431_v13  ;;  %4201 = vmatprep.subr.bf16.mxu1 %v5437_v15 }
 0x184   :  { %4180 = vmatpush3.bf16.msra.mxu0 %v5442_v16  ;;  %4202 = vmatpush3.bf16.msra.mxu1 %v5450_v18 }
 0x185   :  { %4209 = vmatprep.subr.bf16.mxu0 %v5463_v31  ;;  %4231 = vmatprep.subr.bf16.mxu1 %v5470_v22 }
 0x187   :  { %v3930_v55 = vpop.f32.mrf.mxu0  ;;  %3231 = vmatmul.mubr.bf16.vlgmr.msra.gmra.mxu0 %v5353_v49  ;;  %v3952_v47 = vpop.f32.mrf.mxu1  ;;  %3271 = vmatmul.mubr.bf16.vlgmr.msra.gmra.mxu1 %v5360_v52 }
 0x188   :  { %4210 = vmatpush3.bf16.msra.mxu0 %v5477_v32  ;;  %4232 = vmatpush3.bf16.msra.mxu1 %v5486_v35  ;;  %v6509_v32 = vld [vmem:[#allocation10_spill] sm:$0xff]  ;;  %v6510_v35 = vld [vmem:[#allocation11_spill] sm:$0xff] }
 0x189   :  { %v3931_v51 = vpop.f32.mrf.mxu0  ;;  %v3953_v11 = vpop.f32.mrf.mxu1  ;;  %4211 = vmatprep.subr.bf16.mxu0 %v5493_v37  ;;  %4233 = vmatprep.subr.bf16.mxu1 %v5498_v36  ;;  %v6511_v37 = vld [vmem:[#allocation12_spill] sm:$0xff]  ;;  %v6512_v36 = vld [vmem:[#allocation13_spill] sm:$0xff] }
 0x18a   :  { %v3932_v13 = vadd.f32 %v3931_v51, %v3930_v55  ;;  %v3954_v15 = vadd.f32 %v3953_v11, %v3952_v47  ;;  %3310 = vmatprep.mubr.bf16.mxu0 %v5366_v8  ;;  %3350 = vmatprep.mubr.bf16.mxu1 %v5373_v10  ;;  %v6507_v8 = vld [vmem:[#allocation8_spill] sm:$0xff]  ;;  %v6508_v10 = vld [vmem:[#allocation9_spill] sm:$0xff] }
 0x18b   :  { %v3933_v49 = vpop.f32.mrf.mxu0  ;;  %v3955_v16 = vpop.f32.mrf.mxu1 }
 0x18c   :  { %v2753_v18 = vadd.f32 %v3932_v13, %v2713_v34  ;;  %4212 = vmatpush3.bf16.msra.mxu0 %v5505_v40  ;;  %4234 = vmatpush3.bf16.msra.mxu1 %v5510_v43  ;;  %v6513_v40 = vld [vmem:[#allocation14_spill] sm:$0xff]  ;;  %v6514_v43 = vld [vmem:[#allocation15_spill] sm:$0xff] }
 0x18d   :  { %v3934_v52 = vpop.f32.mrf.mxu0  ;;  %v3956_v31 = vpop.f32.mrf.mxu1  ;;  %4213 = vmatprep.subr.bf16.mxu0 %v5517_v44  ;;  %4235 = vmatprep.subr.bf16.mxu1 %v5524_v45  ;;  %v6515_v44 = vld [vmem:[#allocation16_spill] sm:$0xff]  ;;  %v6516_v45 = vld [vmem:[#allocation17_spill] sm:$0xff] }
 0x18e   :  { %v2793_v22 = vadd.f32 %v3954_v15, %v2753_v18 }
 0x190   :  { %4214 = vmatpush3.bf16.msra.mxu0 %v5529_v46  ;;  %4236 = vmatpush3.bf16.msra.mxu1 %v5534_v48  ;;  %v6517_v46 = vld [vmem:[#allocation18_spill] sm:$0xff]  ;;  %v6518_v48 = vld [vmem:[#allocation19_spill] sm:$0xff] }
 0x191   :  { %4215 = vmatprep.subr.bf16.mxu0 %v5541_v9  ;;  %4237 = vmatprep.subr.bf16.mxu1 %v5548_v14  ;;  %v6519_v9 = vld [vmem:[#allocation20_spill] sm:$0xff]  ;;  %v6520_v14 = vld [vmem:[#allocation21_spill] sm:$0xff] }
 0x194   :  { %4216 = vmatpush3.bf16.msra.mxu0 %v5553_v19  ;;  %4238 = vmatpush3.bf16.msra.mxu1 %v5558_v61  ;;  %v6521_v19 = vld [vmem:[#allocation22_spill] sm:$0xff]  ;;  %v6522_v61 = vld [vmem:[#allocation23_spill] sm:$0xff] }
 0x195   :  { %4217 = vmatprep.subr.bf16.mxu0 %v5565_v20  ;;  %4239 = vmatprep.subr.bf16.mxu1 %v6507_v8 }
 0x198   :  { %4218 = vmatpush3.bf16.msra.mxu0 %v6508_v10  ;;  %4240 = vmatpush3.bf16.msra.mxu1 %v6509_v32 }
 0x199   :  { %4219 = vmatprep.subr.bf16.mxu0 %v6510_v35  ;;  %4241 = vmatprep.subr.bf16.mxu1 %v6511_v37 }
 0x19c   :  { %4220 = vmatpush3.bf16.msra.mxu0 %v6512_v36  ;;  %4242 = vmatpush3.bf16.msra.mxu1 %v6513_v40 }
 0x19d   :  { %4221 = vmatprep.subr.bf16.mxu0 %v6514_v43  ;;  %4243 = vmatprep.subr.bf16.mxu1 %v6515_v44 }
 0x1a0   :  { %4222 = vmatpush3.bf16.msra.mxu0 %v6516_v45  ;;  %4244 = vmatpush3.bf16.msra.mxu1 %v6517_v46 }
 0x1a1   :  { %4223 = vmatprep.subr.bf16.mxu0 %v6518_v48  ;;  %4245 = vmatprep.subr.bf16.mxu1 %v6519_v9 }
 0x1a4   :  { %4224 = vmatpush3.bf16.msra.mxu0 %v6520_v14  ;;  %4246 = vmatpush3.bf16.msra.mxu1 %v6521_v19 }
 0x1a5   :  { %4253 = vmatprep.subr.bf16.mxu0 %v6522_v61  ;;  %4304 = vmatprep.subr.bf16.mxu1 %v6490_v29 }
 0x1a7   :  { %v3974_v20 = vpop.f32.mrf.mxu0  ;;  %3311 = vmatmul.mubr.bf16.vlgmr.msra.gmra.mxu0 %v6523_v30  ;;  %v2872_v3 = vpop.f32.mrf.mxu1  ;;  %3351 = vmatmul.mubr.bf16.vlgmr.msra.gmra.mxu1 %v6524_v6 }
 0x1a8   :  { %4254 = vmatpush3.bf16.msra.mxu0 %v6525_v17  ;;  %4305 = vmatpush3.bf16.msra.mxu1 %v6526_v33 }
 0x1a9   :  { %v3975_v12 = vpop.f32.mrf.mxu0  ;;  %v4302_v27 = vpop.f32.mrf.mxu1  ;;  %4255 = vmatprep.subr.bf16.mxu0 %v6527_v28  ;;  %4306 = vmatprep.subr.bf16.mxu1 %v6490_v29 }
 0x1aa   :  { %v3976_v54 = vadd.f32 %v3975_v12, %v3974_v20  ;;  %3390 = vmatprep.mubr.bf16.mxu0 %v5696_v24  ;;  %4320 = vmatprep.mubr.msk.bf16.mxu1 %vm4723_vm0, %v6490_v29  ;;  %v6529_v24 = vld [vmem:[#allocation30_spill] sm:$0xff] }
 0x1ab   :  { %v3977_v57 = vpop.f32.mrf.mxu0  ;;  %v2875_v62 = vpop.f32.mrf.mxu1 }
 0x1ac   :  { %v2833_v50 = vadd.f32 %v3976_v54, %v2793_v22  ;;  %4256 = vmatpush3.bf16.msra.mxu0 %v5705_v25  ;;  %4307 = vmatpush3.bf16.msra.mxu1 %v5710_v39  ;;  %v6531_v25 = vld [vmem:[#allocation32_spill] sm:$0xff]  ;;  %v6532_v39 = vld [vmem:[#allocation33_spill] sm:$0xff] }
 0x1ad   :  { %v3978_v0 = vpop.f32.mrf.mxu0  ;;  %v4303_v34 = vpop.f32.mrf.mxu1  ;;  %4257 = vmatprep.subr.bf16.mxu0 %v6528_v1  ;;  %4308 = vmatprep.subr.bf16.mxu1 %v6490_v29 }
 0x1ae   :  { %v2873_v59 = vadd.f32 %v2872_v3, %v2833_v50 }
 0x1b0   :  { %4258 = vmatpush3.bf16.msra.mxu0 %v5730_v21  ;;  %4309 = vmatpush3.bf16.msra.mxu1 %v6529_v24  ;;  %v6536_v21 = vld [vmem:[#allocation37_spill] sm:$0xff] }
 0x1b1   :  { %4259 = vmatprep.subr.bf16.mxu0 %v6530_v56  ;;  %4310 = vmatprep.subr.bf16.mxu1 %v6490_v29 }
 0x1b4   :  { %4260 = vmatpush3.bf16.msra.mxu0 %v5750_v42  ;;  %4311 = vmatpush3.bf16.msra.mxu1 %v6531_v25  ;;  %v6539_v42 = vld [vmem:[#allocation40_spill] sm:$0xff] }
 0x1b5   :  { %4261 = vmatprep.subr.bf16.mxu0 %v6532_v39  ;;  %4312 = vmatprep.subr.bf16.mxu1 %v6490_v29 }
 0x1b8   :  { %4262 = vmatpush3.bf16.msra.mxu0 %v6533_v58  ;;  %4313 = vmatpush3.bf16.msra.mxu1 %v6534_v60 }
 0x1b9   :  { %4263 = vmatprep.subr.bf16.mxu0 %v6535_v5  ;;  %4314 = vmatprep.subr.bf16.mxu1 %v6490_v29 }
 0x1bc   :  { %4264 = vmatpush3.bf16.msra.mxu0 %v6536_v21  ;;  %4315 = vmatpush3.bf16.msra.mxu1 %v6537_v23 }
 0x1bd   :  { %4265 = vmatprep.subr.bf16.mxu0 %v6538_v38  ;;  %4316 = vmatprep.subr.bf16.mxu1 %v6490_v29 }
 0x1c0   :  { %4266 = vmatpush3.bf16.msra.mxu0 %v6539_v42  ;;  %4317 = vmatpush3.bf16.msra.mxu1 %v6540_v41 }
 0x1c1   :  { %4267 = vmatprep.subr.bf16.mxu0 %v6541_v4  ;;  %4318 = vmatprep.subr.bf16.mxu1 %v6490_v29 }
 0x1c4   :  { %4268 = vmatpush3.bf16.msra.mxu0 %v6542_v7  ;;  %4319 = vmatpush3.bf16.msra.mxu1 %v6543_v26 }
 0x1c7   :  { %v4005_v63 = vpop.f32.mrf.mxu0  ;;  %3391 = vmatmul.mubr.bf16.vlgmr.msra.gmra.mxu0 %v6544_v2  ;;  %4321 = vmatmul.mubr.bf16.vlgmr.msra.gmra.mxu1 %v6545_v53  ;;  %v4027_v55 = vpop.f32.mrf.mxu1 }
 0x1c9   :  { %v4006_v47 = vpop.f32.mrf.mxu0  ;;  %v4028_v51 = vpop.f32.mrf.mxu1 }
 0x1ca   :  { %v4007_v11 = vadd.f32 %v4006_v47, %v4005_v63  ;;  %v4029_v13 = vadd.f32 %v4028_v51, %v4027_v55 }
 0x1cb   :  { %v4008_v15 = vpop.f32.mrf.mxu0  ;;  %v4030_v49 = vpop.f32.mrf.mxu1 }
 0x1cc   :  { %v2913_v16 = vadd.f32 %v4007_v11, %v2873_v59 }
 0x1cd   :  { %v4009_v18 = vpop.f32.mrf.mxu0  ;;  %v4031_v52 = vpop.f32.mrf.mxu1 }
 0x1ce   :  { %v2953_v31 = vadd.f32 %v4029_v13, %v2913_v16 }
 0x1e7   :  { %v4049_v22 = vpop.f32.mrf.mxu0  ;;  %v4071_v8 = vpop.f32.mrf.mxu1 }
 0x1e9   :  { %v4050_v10 = vpop.f32.mrf.mxu0  ;;  %v4072_v32 = vpop.f32.mrf.mxu1 }
 0x1ea   :  { %v4051_v35 = vadd.f32 %v4050_v10, %v4049_v22  ;;  %v4073_v37 = vadd.f32 %v4072_v32, %v4071_v8 }
 0x1eb   :  { %v4052_v36 = vpop.f32.mrf.mxu0  ;;  %v4074_v40 = vpop.f32.mrf.mxu1 }
 0x1ec   :  { %v2993_v43 = vadd.f32 %v4051_v35, %v2953_v31  ;;  %v3439_v40 = vld [vmem:[%s6424_s2] sm:$0x1]  ;;  %s4724_s2 = smov [#allocation3]  }
 0x1ed   :  { %v4053_v44 = vpop.f32.mrf.mxu0  ;;  %v4075_v45 = vpop.f32.mrf.mxu1  ;;  %s3470_s17 = sshll.u32 %s4724_s2, 4  ;;  %s3471_s17 = int_to_ptr.vmem [resolvable:$true] %s3470_s17 }
 0x1ee   :  { %v3033_v46 = vadd.f32 %v4073_v37, %v2993_v43  ;;  %v3442_v45 = vld [vmem:[#allocation2] sm:$0x1]  ;;  %s4699_s19 = scalar_lea.vmem %s3471_s17, 16  ;;  %s4703_s20 = scalar_lea.vmem %s3471_s17, 32 }
 0x1ef   :  { %p4700_p0 = scmp.ne.s32.totalorder %s3471_s17, %s4699_s19  ;;  %p4704_p1 = scmp.lt.s32.totalorder %s3471_s17, %s3471_s17 }
 0x1f0   :  { %p4705_p2 = scmp.lt.s32.totalorder %s4703_s20, %s4699_s19 }
 0x1f2   :  { %p4706_p3 = por %p4705_p2, %p4704_p1 }
 0x1f4   :  { %p4707_p4 = pnand %p4706_p3, %p4700_p0 }
 0x207   :  { %v4093_v48 = vpop.f32.mrf.mxu0  ;;  %v4115_v9 = vpop.f32.mrf.mxu1 }
 0x209   :  { %v4094_v14 = vpop.f32.mrf.mxu0  ;;  %v4116_v19 = vpop.f32.mrf.mxu1 }
 0x20a   :  { %v4095_v61 = vadd.f32 %v4094_v14, %v4093_v48  ;;  %v4117_v20 = vadd.f32 %v4116_v19, %v4115_v9 }
 0x20b   :  { %v4096_v30 = vpop.f32.mrf.mxu0  ;;  %v4118_v3 = vpop.f32.mrf.mxu1 }
 0x20c   :  { %v3073_v6 = vadd.f32 %v4095_v61, %v3033_v46 }
 0x20d   :  { %v4097_v17 = vpop.f32.mrf.mxu0  ;;  %v4119_v33 = vpop.f32.mrf.mxu1 }
 0x20e   :  { %v3113_v12 = vadd.f32 %v4117_v20, %v3073_v6 }
 0x227   :  { %v4137_v27 = vpop.f32.mrf.mxu0  ;;  %v4159_v28 = vpop.f32.mrf.mxu1 }
 0x229   :  { %v4138_v54 = vpop.f32.mrf.mxu0  ;;  %v4160_v57 = vpop.f32.mrf.mxu1 }
 0x22a   :  { %v4139_v62 = vadd.f32 %v4138_v54, %v4137_v27  ;;  %v4161_v50 = vadd.f32 %v4160_v57, %v4159_v28 }
 0x22b   :  { %v4140_v0 = vpop.f32.mrf.mxu0  ;;  %v4162_v34 = vpop.f32.mrf.mxu1 }
 0x22c   :  { %v3153_v1 = vadd.f32 %v4139_v62, %v3113_v12 }
 0x22d   :  { %v4141_v59 = vpop.f32.mrf.mxu0  ;;  %v4163_v24 = vpop.f32.mrf.mxu1 }
 0x22e   :  { %v3193_v56 = vadd.f32 %v4161_v50, %v3153_v1 }
 0x247   :  { %v4181_v25 = vpop.f32.mrf.mxu0  ;;  %v4203_v39 = vpop.f32.mrf.mxu1 }
 0x249   :  { %v4182_v58 = vpop.f32.mrf.mxu0  ;;  %v4204_v60 = vpop.f32.mrf.mxu1 }
 0x24a   :  { %v4183_v53 = vadd.f32 %v4182_v58, %v4181_v25  ;;  %v4205_v47 = vadd.f32 %v4204_v60, %v4203_v39 }
 0x24b   :  { %v4184_v5 = vpop.f32.mrf.mxu0  ;;  %v4206_v21 = vpop.f32.mrf.mxu1 }
 0x24c   :  { %v3233_v55 = vadd.f32 %v4183_v53, %v3193_v56 }
 0x24d   :  { %v4185_v23 = vpop.f32.mrf.mxu0  ;;  %v4207_v29 = vpop.f32.mrf.mxu1 }
 0x24e   :  { %v3273_v11 = vadd.f32 %v4205_v47, %v3233_v55 }
 0x267   :  { %v4225_v38 = vpop.f32.mrf.mxu0  ;;  %v4247_v42 = vpop.f32.mrf.mxu1 }
 0x269   :  { %v4226_v41 = vpop.f32.mrf.mxu0  ;;  %v4248_v4 = vpop.f32.mrf.mxu1 }
 0x26a   :  { %v4227_v51 = vadd.f32 %v4226_v41, %v4225_v38  ;;  %v4249_v15 = vadd.f32 %v4248_v4, %v4247_v42 }
 0x26b   :  { %v4228_v7 = vpop.f32.mrf.mxu0  ;;  %v4250_v26 = vpop.f32.mrf.mxu1 }
 0x26c   :  { %v3313_v13 = vadd.f32 %v4227_v51, %v3273_v11 }
 0x26d   :  { %v4229_v63 = vpop.f32.mrf.mxu0  ;;  %v4251_v2 = vpop.f32.mrf.mxu1 }
 0x26e   :  { %v3353_v31 = vadd.f32 %v4249_v15, %v3313_v13 }
 0x287   :  { %v4269_v49 = vpop.f32.mrf.mxu0  ;;  %v3432_v16 = vpop.f32.mrf.mxu1 }
 0x289   :  { %v4270_v18 = vpop.f32.mrf.mxu0  ;;  %v4322_v52 = vpop.f32.mrf.mxu1 }
 0x28a   :  { %v4271_v22 = vadd.f32 %v4270_v18, %v4269_v49 }
 0x28b   :  { %v4272_v8 = vpop.f32.mrf.mxu0  ;;  %v3435_v10 = vpop.f32.mrf.mxu1 }
 0x28c   :  { %v3393_v32 = vadd.f32 %v4271_v22, %v3353_v31 }
 0x28d   :  { %v4273_v35 = vpop.f32.mrf.mxu0  ;;  %v4323_v37 = vpop.f32.mrf.mxu1 }
 0x28e   :  { %v3433_v36 = vadd.f32 %v3432_v16, %v3393_v32 }
 0x290   :  { %v3438_v43 = vmul.f32 50.0, %v3433_v36 }
 0x292   :  { %v3440_v44 = vsub.f32 %v3438_v43, %v3439_v40 }
 0x294   :  { %v3441_v46 = vand.u32 2147483647, %v3440_v44 }
 0x296   :  { %v3443_v48 = vadd.f32 %v3442_v45, %v3441_v46 }
 0x298   :  { %3445 = vst.msk [vmem:[#allocation2] sm:$0x1] %vm20_vm1, %v3443_v48 }
 0x29f   :  { %v3449_v9 = vld [vmem:[#allocation2] sm:$0x1] }
 0x2a0   :  { %v3450_v14 = vsel %vm20_vm1, %v3449_v9, 0.0 }
 0x2a1   :  { %3451 = vadd.xlane.f32.xlu0 %v3450_v14 }
 0x32a   :  { %v3452_v19 = vpop.xlane.xlu0 %3451 }
 0x32b   :  { %v3453_v61 = vrot.slane %v3452_v19, 4 }
 0x32d   :  { %v3454_v20 = vadd.f32 %v3453_v61, %v3452_v19 }
 0x32f   :  { %v3455_v30 = vrot.slane %v3454_v20, 2 }
 0x331   :  { %v3456_v3 = vadd.f32 %v3455_v30, %v3454_v20 }
 0x333   :  { %v3457_v6 = vrot.slane %v3456_v3, 1 }
 0x335   :  { %v3458_v17 = vadd.f32 %v3457_v6, %v3456_v3 }
 0x337   :  { %4324 = vpush %v3458_v17 }
 0x368   :  { %s4325_s18 = spop %4324 }
 0x369   :  { %v3460_v33 = vstv %s4325_s18 }
 0x36a   :  { %v3461_v12 = vmul.f32 0.125, %v3460_v33 }
 0x36c   :  { %3463 = vst.msk [vmem:[#allocation3] sm:$0x1] %vm3462_vm2, %v3461_v12 }
 0x36d   :  { %4710 = shalt.err (!%p4707_p4)
}
 0x36e   :  { %3473 = dma.vmem_to_hbm [thread:$0]  %s3471_s17, 16, %s6425_s3, [#allocation4]  }
 0x36f   :  { %4719 = dma.done.wait [#allocation4], 16  }
 0x370   :  { %4720 = vsyncadd [#allocation4], 4294967280 }
 0x371   :  { %3477 = vsyncpa [#allocation4], 1 }

</bundles_post_ra>
